<compile_context>
chip_gen: v7x
topology: tpu7x:2x2x1
jax: 0.10.0
libtpu: 0.0.40
codegen_flags: <defaults>
</compile_context>

<pallas_src>
import functools

import numpy as np
import jax
import jax.numpy as jnp
from jax.experimental import pallas as pl
from jax.experimental.pallas import tpu as pltpu


# ---------------------------------------------------------------------------
# Fused per-image Pallas kernel: the entire encoder/decoder forward pass
# ---------------------------------------------------------------------------
def _fused_unet_kernel(x_ref,
                       b1_ref, m1_ref, s1_ref, t1_ref,
                       b2_ref, m2_ref, s2_ref, t2_ref,
                       b3_ref, m3_ref, s3_ref, t3_ref,
                       b4_ref, s4_ref, t4_ref,
                       o_ref, *, relu_flags):
    """One image per grid step; every intermediate activation stays on-chip.

    x_ref : (1, H+2, (W+2)*Cin)          zero-padded input rows of one image
    b*_ref: (3*Wp_in*Cin*n_src, Lout)    K-packed block-banded conv weights (bf16)
    m*_ref: (rows_out, rows_conv)        tiny per-image 0/1 row maps (pad-row insert,
                                         H-stride, nearest H-upsample), f32
    s*/t* : (1, Lout)                    folded-BatchNorm scale / bias (f32)
    o_ref : (1, H, 128)                  lane-dense (zero-padded) head output
    """

    def shift_cat(*srcs):
        # im2col over the 3 kernel rows (per source): one lane concat -> one matmul.
        parts = []
        for s in srcs:
            r = s.shape[0] - 2
            parts += [s[0:r, :], s[1:r + 1, :], s[2:r + 2, :]]
        return jnp.concatenate(parts, axis=-1).astype(jnp.bfloat16)

    def band_conv(lhs_bf16, b_ref, scale_ref, bias_ref, relu):
        # Single MXU matmul per conv (K = 3*Wp*Cin*n_src), f32 accumulate.
        y = jnp.dot(lhs_bf16, b_ref[...], preferred_element_type=jnp.float32)
        y = y * scale_ref[...] + bias_ref[...]        # folded BatchNorm affine (f32)
        if relu:
            y = jnp.maximum(y, 0.0)
        return y

    def remap(m_ref, y):
        # 0/1 row map: insert the next layer's zero pad rows / H-stride / H-upsample.
        return jnp.dot(m_ref[...], y, preferred_element_type=jnp.float32)

    x = x_ref[0]                                                          # (H+2, (W+2)*Cin)

    y1 = band_conv(shift_cat(x), b1_ref, s1_ref, t1_ref, relu_flags[0])   # enc level 1
    a1 = remap(m1_ref, y1)                                                # (H+2, (W+2)*C1)

    y2 = band_conv(shift_cat(a1), b2_ref, s2_ref, t2_ref, relu_flags[1])  # enc level 2 (s=2)
    a2 = remap(m2_ref, y2)                                                # (H/2+2, (W/2+2)*C2)

    y3 = band_conv(shift_cat(a2), b3_ref, s3_ref, t3_ref, relu_flags[2])  # dec level 1 (skip folded, x2 up)
    a3 = remap(m3_ref, y3)                                                # (H+2, (W+2)*C3)

    y4 = band_conv(shift_cat(a3, a1), b4_ref, s4_ref, t4_ref, relu_flags[3])  # dec level 2 (head, no ReLU)
    o_ref[0] = y4.astype(o_ref.dtype)                                     # (H, 128) lane-dense store


# ---------------------------------------------------------------------------
# Host-side precomputation of banded weights / row maps / tiled affines
# ---------------------------------------------------------------------------
def _band_weights(w, *, wp_in, wo, stride, pad_out, upsample):
    """Block-banded matrix per kernel row ky.

    Output lane block for spatial column x (duplicated when upsampling) is fed by input
    lane block x*stride + kx, so one (Wp_in*Cin, Lout) matmul realises the whole kx/ci
    contraction for a fixed ky.  pad_out shifts output blocks by one and leaves zero
    border columns so the result lands directly in the next layer's padded lane layout.
    """
    kh, kw, cin, cout = w.shape
    dup = 2 if upsample else 1
    nblk = dup * wo + (2 if pad_out else 0)
    off = 1 if pad_out else 0
    b = np.zeros((kh, wp_in * cin, nblk * cout), np.float32)
    for ky in range(kh):
        for x in range(wo):
            for kx in range(kw):
                xi = x * stride + kx
                for d in range(dup):
                    xo = dup * x + d + off
                    b[ky, xi * cin:(xi + 1) * cin, xo * cout:(xo + 1) * cout] = w[ky, kx]
    return b


def _pack_k(band):
    """(3, K, L) per-ky slabs -> (3K, L), matching the kernel's shift_cat order."""
    return np.concatenate(list(band), axis=0)


def _row_map_img(h_in, *, stride, upsample, pad_out):
    """Per-image 0/1 map: stride-1 banded-conv rows -> next layer's row layout."""
    h_out = (h_in - 1) // stride + 1
    dup = 2 if upsample else 1
    off = 1 if pad_out else 0
    rows_out = dup * h_out + (2 if pad_out else 0)
    m = np.zeros((rows_out, h_in), np.float32)
    for yo in range(dup * h_out):
        m[yo + off, (yo // dup) * stride] = 1.0
    return m


def _affine_lanes(scale, bias, *, wo, upsample, pad_out):
    """Tile per-channel folded-BN scale/bias over the (x, c) lane layout."""
    cout = scale.shape[0]
    dup = 2 if upsample else 1
    s = np.tile(scale, dup * wo)
    t = np.tile(bias, dup * wo)
    if pad_out:
        z = np.zeros(cout, np.float32)
        s = np.concatenate([z, s, z])
        t = np.concatenate([z, t, z])
    return s[None, :].astype(np.float32), t[None, :].astype(np.float32)


def prepare_network(params, h, w):
    """Build the fused kernel's constant operands from the module parameters."""
    enc1 = params["encoder"][0][0]
    enc2 = params["encoder"][1][0]
    dec1 = params["decoder"][0][0]
    dec2 = params["decoder"][1][0]
    f32 = lambda a: np.asarray(a, np.float32)

    s2_ = enc2["stride"]
    assert h % s2_ == 0 and w % s2_ == 0, \
        "x2 nearest upsample must match the level-1 skip (even H, W required)"
    h2 = (h - 1) // s2_ + 1
    w2 = (w - 1) // s2_ + 1

    # encoder level 1: (h, w, 4) -> (h, w, 8)
    b1 = _pack_k(_band_weights(f32(enc1["w"]), wp_in=w + 2, wo=w, stride=enc1["stride"],
                               pad_out=True, upsample=False))
    m1 = _row_map_img(h, stride=enc1["stride"], upsample=False, pad_out=True)
    s1, t1 = _affine_lanes(f32(enc1["scale"]), f32(enc1["bias"]),
                           wo=w, upsample=False, pad_out=True)

    # encoder level 2: (h, w, 8) -> (h/2, w/2, 16), stride 2
    b2 = _pack_k(_band_weights(f32(enc2["w"]), wp_in=w + 2, wo=w2, stride=s2_,
                               pad_out=True, upsample=False))
    m2 = _row_map_img(h, stride=s2_, upsample=False, pad_out=True)
    s2, t2 = _affine_lanes(f32(enc2["scale"]), f32(enc2["bias"]),
                           wo=w2, upsample=False, pad_out=True)

    # decoder level 1: cat([x, skip]) with x == skip == enc2_out, so fold the skip
    # into the weights host-side: conv(cat(a2, a2)) == (W_left + W_right) conv a2.
    w3 = f32(dec1["w"])
    c3 = int(enc2["w"].shape[-1])
    assert w3.shape[2] == 2 * c3
    w3_eff = w3[:, :, :c3, :] + w3[:, :, c3:, :]
    b3 = _pack_k(_band_weights(w3_eff, wp_in=w2 + 2, wo=w2, stride=dec1["stride"],
                               pad_out=True, upsample=True))
    m3 = _row_map_img(h2, stride=dec1["stride"], upsample=True, pad_out=True)
    s3, t3 = _affine_lanes(f32(dec1["scale"]), f32(dec1["bias"]),
                           wo=w2, upsample=True, pad_out=True)

    # decoder level 2 (head): cat([x_up, enc1_out]) -> conv(16->4), no ReLU, no pad_out
    w4 = f32(dec2["w"])
    c4 = int(dec1["w"].shape[-1])
    assert w4.shape[2] == c4 + int(enc1["w"].shape[-1])
    b4 = np.concatenate(
        [_pack_k(_band_weights(w4[:, :, :c4, :], wp_in=w + 2, wo=w, stride=dec2["stride"],
                               pad_out=False, upsample=False)),
         _pack_k(_band_weights(w4[:, :, c4:, :], wp_in=w + 2, wo=w, stride=dec2["stride"],
                               pad_out=False, upsample=False))], axis=0)
    s4, t4 = _affine_lanes(f32(dec2["scale"]), f32(dec2["bias"]),
                           wo=w, upsample=False, pad_out=False)

    # Lane-dense head: zero-pad the output lane layout to a multiple of 128 so the
    # final store is unmasked; the wrapper slices the padding off.
    cout_final = int(dec2["w"].shape[-1])
    lanes = w * cout_final
    pad = (-lanes) % 128
    if pad:
        b4 = np.pad(b4, ((0, 0), (0, pad)))
        s4 = np.pad(s4, ((0, 0), (0, pad)))
        t4 = np.pad(t4, ((0, 0), (0, pad)))

    bf16 = lambda a: jnp.asarray(a, jnp.bfloat16)   # halves the dominant weight DMA
    fj = lambda a: jnp.asarray(a, jnp.float32)
    arrays = (bf16(b1), fj(m1), fj(s1), fj(t1),
              bf16(b2), fj(m2), fj(s2), fj(t2),
              bf16(b3), fj(m3), fj(s3), fj(t3),
              bf16(b4), fj(s4), fj(t4))
    return arrays, cout_final


# ---------------------------------------------------------------------------
# Parameter construction (deterministic, synthetic; eval-mode BatchNorm folded)
# ---------------------------------------------------------------------------
def _fold_bn(gamma, beta, mean, var, eps=1e-5):
    scale = gamma / jnp.sqrt(var + eps)
    bias = beta - mean * scale
    return scale, bias


def _init_block(key, cin, cout, *, stride=1, relu=True, upsample=False):
    kw_, kg, kb = jax.random.split(key, 3)
    w = 0.1 * jax.random.normal(kw_, (3, 3, cin, cout), jnp.float32)
    gamma = 1.0 + 0.05 * jax.random.normal(kg, (cout,), jnp.float32)
    beta = 0.05 * jax.random.normal(kb, (cout,), jnp.float32)
    running_mean = jnp.zeros((cout,), jnp.float32)
    running_var = jnp.ones((cout,), jnp.float32)
    scale, bias = _fold_bn(gamma, beta, running_mean, running_var)
    return dict(w=w, scale=scale, bias=bias,
                stride=stride, relu=relu, upsample=upsample)


def init_params(key):
    k1, k2, k3, k4 = jax.random.split(key, 4)
    encoder = [
        [_init_block(k1, 4, 8, stride=1, relu=True)],                   # level 1
        [_init_block(k2, 8, 16, stride=2, relu=True)],                  # level 2
    ]
    decoder = [
        [_init_block(k3, 32, 8, stride=1, relu=True, upsample=True)],   # level 1
        [_init_block(k4, 16, 4, stride=1, relu=False)],                 # level 2 (head)
    ]
    return dict(encoder=encoder, decoder=decoder, skip_connections=[True, True])


# ---------------------------------------------------------------------------
# Forward pass (mirrors SegmentationModel.forward, fully fused on-chip)
# ---------------------------------------------------------------------------
def segmentation_forward(x_nchw, prep, relu_flags, cout_final):
    n, c, h, w = x_nchw.shape
    lanes_pad = prep[-1].shape[1]          # padded output lane count (multiple of 128)

    # One-time glue: NCHW -> per-image zero-padded row layout (N, H+2, (W+2)*C).
    x = jnp.transpose(x_nchw, (0, 2, 3, 1)).astype(jnp.float32)
    xp = jnp.pad(x, ((0, 0), (1, 1), (1, 1), (0, 0)))
    x_rows = xp.reshape(n, h + 2, (w + 2) * c)

    const2 = lambda i: (0, 0)              # weights / maps / affines: shared constants
    in_specs = [pl.BlockSpec((1, h + 2, (w + 2) * c), lambda i: (i, 0, 0))]
    in_specs += [pl.BlockSpec(p.shape, const2) for p in prep]

    out_rows = pl.pallas_call(
        functools.partial(_fused_unet_kernel, relu_flags=relu_flags),
        out_shape=jax.ShapeDtypeStruct((n, h, lanes_pad), jnp.float32),
        grid=(n,),                         # one image per step; 2 TCs on v7x
        in_specs=in_specs,
        out_specs=pl.BlockSpec((1, h, lanes_pad), lambda i: (i, 0, 0)),
        compiler_params=pltpu.CompilerParams(dimension_semantics=("parallel",)),
    )(x_rows, *prep)

    out = out_rows[:, :, :w * cout_final].reshape(n, h, w, cout_final)
    return jnp.transpose(out, (0, 3, 1, 2))   # NHWC rows -> NCHW


# ---------------------------------------------------------------------------
if __name__ == "__main__":
    key = jax.random.PRNGKey(0)
    kx, kp = jax.random.split(key)

    x = jax.random.normal(kx, (2, 4, 16, 16), jnp.float32)  # NCHW, like PyTorch
    params = init_params(kp)

    n_img, _, h, w = x.shape
    prep, cout_final = prepare_network(params, h, w)
    relu_flags = (params["encoder"][0][0]["relu"], params["encoder"][1][0]["relu"],
                  params["decoder"][0][0]["relu"], params["decoder"][1][0]["relu"])

    fwd = jax.jit(lambda inp: segmentation_forward(inp, prep, relu_flags, cout_final))
    out = jax.block_until_ready(fwd(x))

    assert out.shape == (2, 4, 16, 16), out.shape
    assert bool(jnp.all(jnp.isfinite(out)))
    print("KERNEL_OK")
</pallas_src>

<mosaic_0001>
module attributes {stable_mosaic.version = 11 : i64} {
  func.func @_fused_unet_kernel(%arg0: i32, %arg1: memref<1x18x72xf32, #tpu.memory_space<vmem>>, %arg2: memref<216x144xbf16, #tpu.memory_space<vmem>>, %arg3: memref<18x16xf32, #tpu.memory_space<vmem>>, %arg4: memref<1x144xf32, #tpu.memory_space<vmem>>, %arg5: memref<1x144xf32, #tpu.memory_space<vmem>>, %arg6: memref<432x160xbf16, #tpu.memory_space<vmem>>, %arg7: memref<10x16xf32, #tpu.memory_space<vmem>>, %arg8: memref<1x160xf32, #tpu.memory_space<vmem>>, %arg9: memref<1x160xf32, #tpu.memory_space<vmem>>, %arg10: memref<480x144xbf16, #tpu.memory_space<vmem>>, %arg11: memref<18x8xf32, #tpu.memory_space<vmem>>, %arg12: memref<1x144xf32, #tpu.memory_space<vmem>>, %arg13: memref<1x144xf32, #tpu.memory_space<vmem>>, %arg14: memref<864x128xbf16, #tpu.memory_space<vmem>>, %arg15: memref<1x128xf32, #tpu.memory_space<vmem>>, %arg16: memref<1x128xf32, #tpu.memory_space<vmem>>, %arg17: memref<1x16x128xf32, #tpu.memory_space<vmem>>) attributes {dimension_semantics = [#tpu.dimension_semantics<parallel>], iteration_bounds = array<i64: 2>, scalar_prefetch = 0 : i64, scratch_operands = 0 : i64, tpu.core_type = #tpu.core_type<tc>, window_params = [{transform_indices = @transform_0, window_bounds = array<i64: 1, 18, 72>}, {pipeline_mode = #tpu.pipeline_mode<synchronous>, transform_indices = @transform_1, window_bounds = array<i64: 216, 144>}, {pipeline_mode = #tpu.pipeline_mode<synchronous>, transform_indices = @transform_2, window_bounds = array<i64: 18, 16>}, {pipeline_mode = #tpu.pipeline_mode<synchronous>, transform_indices = @transform_3, window_bounds = array<i64: 1, 144>}, {pipeline_mode = #tpu.pipeline_mode<synchronous>, transform_indices = @transform_4, window_bounds = array<i64: 1, 144>}, {pipeline_mode = #tpu.pipeline_mode<synchronous>, transform_indices = @transform_5, window_bounds = array<i64: 432, 160>}, {pipeline_mode = #tpu.pipeline_mode<synchronous>, transform_indices = @transform_6, window_bounds = array<i64: 10, 16>}, {pipeline_mode = #tpu.pipeline_mode<synchronous>, transform_indices = @transform_7, window_bounds = array<i64: 1, 160>}, {pipeline_mode = #tpu.pipeline_mode<synchronous>, transform_indices = @transform_8, window_bounds = array<i64: 1, 160>}, {pipeline_mode = #tpu.pipeline_mode<synchronous>, transform_indices = @transform_9, window_bounds = array<i64: 480, 144>}, {pipeline_mode = #tpu.pipeline_mode<synchronous>, transform_indices = @transform_10, window_bounds = array<i64: 18, 8>}, {pipeline_mode = #tpu.pipeline_mode<synchronous>, transform_indices = @transform_11, window_bounds = array<i64: 1, 144>}, {pipeline_mode = #tpu.pipeline_mode<synchronous>, transform_indices = @transform_12, window_bounds = array<i64: 1, 144>}, {pipeline_mode = #tpu.pipeline_mode<synchronous>, transform_indices = @transform_13, window_bounds = array<i64: 864, 128>}, {pipeline_mode = #tpu.pipeline_mode<synchronous>, transform_indices = @transform_14, window_bounds = array<i64: 1, 128>}, {pipeline_mode = #tpu.pipeline_mode<synchronous>, transform_indices = @transform_15, window_bounds = array<i64: 1, 128>}, {transform_indices = @transform_16, window_bounds = array<i64: 1, 16, 128>}]} {
    %c0 = arith.constant 0 : index
    %c0_0 = arith.constant 0 : index
    %c0_1 = arith.constant 0 : index
    %0 = vector.load %arg1[%c0, %c0_0, %c0_1] : memref<1x18x72xf32, #tpu.memory_space<vmem>>, vector<1x18x72xf32>
    %1 = vector.shape_cast %0 : vector<1x18x72xf32> to vector<18x72xf32>
    %2 = vector.extract_strided_slice %1 {offsets = [0, 0], sizes = [16, 72], strides = [1, 1]} : vector<18x72xf32> to vector<16x72xf32>
    %3 = vector.extract_strided_slice %1 {offsets = [1, 0], sizes = [16, 72], strides = [1, 1]} : vector<18x72xf32> to vector<16x72xf32>
    %4 = vector.extract_strided_slice %1 {offsets = [2, 0], sizes = [16, 72], strides = [1, 1]} : vector<18x72xf32> to vector<16x72xf32>
    %5 = tpu.concatenate %2, %3, %4 in 1 : vector<16x72xf32>, vector<16x72xf32>, vector<16x72xf32> -> vector<16x216xf32>
    %6 = arith.truncf %5 : vector<16x216xf32> to vector<16x216xbf16>
    %c0_2 = arith.constant 0 : index
    %c0_3 = arith.constant 0 : index
    %7 = vector.load %arg2[%c0_2, %c0_3] : memref<216x144xbf16, #tpu.memory_space<vmem>>, vector<216x144xbf16>
    %cst = arith.constant dense<0.000000e+00> : vector<16x144xf32>
    %8 = tpu.matmul %6, %7, %cst {dimension_numbers = #tpu.dot_dimension_numbers<[1], [0], [0], [1], [0, 0, 1, 1], [], []>} : vector<16x216xbf16>, vector<216x144xbf16>, vector<16x144xf32> -> vector<16x144xf32>
    %c0_4 = arith.constant 0 : index
    %c0_5 = arith.constant 0 : index
    %9 = vector.load %arg4[%c0_4, %c0_5] : memref<1x144xf32, #tpu.memory_space<vmem>>, vector<1x144xf32>
    %10 = vector.broadcast %9 : vector<1x144xf32> to vector<16x144xf32>
    %11 = arith.mulf %8, %10 : vector<16x144xf32>
    %c0_6 = arith.constant 0 : index
    %c0_7 = arith.constant 0 : index
    %12 = vector.load %arg5[%c0_6, %c0_7] : memref<1x144xf32, #tpu.memory_space<vmem>>, vector<1x144xf32>
    %13 = vector.broadcast %12 : vector<1x144xf32> to vector<16x144xf32>
    %14 = arith.addf %11, %13 : vector<16x144xf32>
    %cst_8 = arith.constant 0.000000e+00 : f32
    %15 = vector.broadcast %cst_8 : f32 to vector<16x144xf32>
    %16 = arith.maximumf %14, %15 : vector<16x144xf32>
    %c0_9 = arith.constant 0 : index
    %c0_10 = arith.constant 0 : index
    %17 = vector.load %arg3[%c0_9, %c0_10] : memref<18x16xf32, #tpu.memory_space<vmem>>, vector<18x16xf32>
    %cst_11 = arith.constant dense<0.000000e+00> : vector<18x144xf32>
    %18 = tpu.matmul %17, %16, %cst_11 {dimension_numbers = #tpu.dot_dimension_numbers<[1], [0], [0], [1], [0, 0, 1, 1], [], []>} : vector<18x16xf32>, vector<16x144xf32>, vector<18x144xf32> -> vector<18x144xf32>
    %19 = vector.extract_strided_slice %18 {offsets = [0, 0], sizes = [16, 144], strides = [1, 1]} : vector<18x144xf32> to vector<16x144xf32>
    %20 = vector.extract_strided_slice %18 {offsets = [1, 0], sizes = [16, 144], strides = [1, 1]} : vector<18x144xf32> to vector<16x144xf32>
    %21 = vector.extract_strided_slice %18 {offsets = [2, 0], sizes = [16, 144], strides = [1, 1]} : vector<18x144xf32> to vector<16x144xf32>
    %22 = tpu.concatenate %19, %20, %21 in 1 : vector<16x144xf32>, vector<16x144xf32>, vector<16x144xf32> -> vector<16x432xf32>
    %23 = arith.truncf %22 : vector<16x432xf32> to vector<16x432xbf16>
    %c0_12 = arith.constant 0 : index
    %c0_13 = arith.constant 0 : index
    %24 = vector.load %arg6[%c0_12, %c0_13] : memref<432x160xbf16, #tpu.memory_space<vmem>>, vector<432x160xbf16>
    %cst_14 = arith.constant dense<0.000000e+00> : vector<16x160xf32>
    %25 = tpu.matmul %23, %24, %cst_14 {dimension_numbers = #tpu.dot_dimension_numbers<[1], [0], [0], [1], [0, 0, 1, 1], [], []>} : vector<16x432xbf16>, vector<432x160xbf16>, vector<16x160xf32> -> vector<16x160xf32>
    %c0_15 = arith.constant 0 : index
    %c0_16 = arith.constant 0 : index
    %26 = vector.load %arg8[%c0_15, %c0_16] : memref<1x160xf32, #tpu.memory_space<vmem>>, vector<1x160xf32>
    %27 = vector.broadcast %26 : vector<1x160xf32> to vector<16x160xf32>
    %28 = arith.mulf %25, %27 : vector<16x160xf32>
    %c0_17 = arith.constant 0 : index
    %c0_18 = arith.constant 0 : index
    %29 = vector.load %arg9[%c0_17, %c0_18] : memref<1x160xf32, #tpu.memory_space<vmem>>, vector<1x160xf32>
    %30 = vector.broadcast %29 : vector<1x160xf32> to vector<16x160xf32>
    %31 = arith.addf %28, %30 : vector<16x160xf32>
    %cst_19 = arith.constant 0.000000e+00 : f32
    %32 = vector.broadcast %cst_19 : f32 to vector<16x160xf32>
    %33 = arith.maximumf %31, %32 : vector<16x160xf32>
    %c0_20 = arith.constant 0 : index
    %c0_21 = arith.constant 0 : index
    %34 = vector.load %arg7[%c0_20, %c0_21] : memref<10x16xf32, #tpu.memory_space<vmem>>, vector<10x16xf32>
    %cst_22 = arith.constant dense<0.000000e+00> : vector<10x160xf32>
    %35 = tpu.matmul %34, %33, %cst_22 {dimension_numbers = #tpu.dot_dimension_numbers<[1], [0], [0], [1], [0, 0, 1, 1], [], []>} : vector<10x16xf32>, vector<16x160xf32>, vector<10x160xf32> -> vector<10x160xf32>
    %36 = vector.extract_strided_slice %35 {offsets = [0, 0], sizes = [8, 160], strides = [1, 1]} : vector<10x160xf32> to vector<8x160xf32>
    %37 = vector.extract_strided_slice %35 {offsets = [1, 0], sizes = [8, 160], strides = [1, 1]} : vector<10x160xf32> to vector<8x160xf32>
    %38 = vector.extract_strided_slice %35 {offsets = [2, 0], sizes = [8, 160], strides = [1, 1]} : vector<10x160xf32> to vector<8x160xf32>
    %39 = tpu.concatenate %36, %37, %38 in 1 : vector<8x160xf32>, vector<8x160xf32>, vector<8x160xf32> -> vector<8x480xf32>
    %40 = arith.truncf %39 : vector<8x480xf32> to vector<8x480xbf16>
    %c0_23 = arith.constant 0 : index
    %c0_24 = arith.constant 0 : index
    %41 = vector.load %arg10[%c0_23, %c0_24] : memref<480x144xbf16, #tpu.memory_space<vmem>>, vector<480x144xbf16>
    %cst_25 = arith.constant dense<0.000000e+00> : vector<8x144xf32>
    %42 = tpu.matmul %40, %41, %cst_25 {dimension_numbers = #tpu.dot_dimension_numbers<[1], [0], [0], [1], [0, 0, 1, 1], [], []>} : vector<8x480xbf16>, vector<480x144xbf16>, vector<8x144xf32> -> vector<8x144xf32>
    %c0_26 = arith.constant 0 : index
    %c0_27 = arith.constant 0 : index
    %43 = vector.load %arg12[%c0_26, %c0_27] : memref<1x144xf32, #tpu.memory_space<vmem>>, vector<1x144xf32>
    %44 = vector.broadcast %43 : vector<1x144xf32> to vector<8x144xf32>
    %45 = arith.mulf %42, %44 : vector<8x144xf32>
    %c0_28 = arith.constant 0 : index
    %c0_29 = arith.constant 0 : index
    %46 = vector.load %arg13[%c0_28, %c0_29] : memref<1x144xf32, #tpu.memory_space<vmem>>, vector<1x144xf32>
    %47 = vector.broadcast %46 : vector<1x144xf32> to vector<8x144xf32>
    %48 = arith.addf %45, %47 : vector<8x144xf32>
    %cst_30 = arith.constant 0.000000e+00 : f32
    %49 = vector.broadcast %cst_30 : f32 to vector<8x144xf32>
    %50 = arith.maximumf %48, %49 : vector<8x144xf32>
    %c0_31 = arith.constant 0 : index
    %c0_32 = arith.constant 0 : index
    %51 = vector.load %arg11[%c0_31, %c0_32] : memref<18x8xf32, #tpu.memory_space<vmem>>, vector<18x8xf32>
    %cst_33 = arith.constant dense<0.000000e+00> : vector<18x144xf32>
    %52 = tpu.matmul %51, %50, %cst_33 {dimension_numbers = #tpu.dot_dimension_numbers<[1], [0], [0], [1], [0, 0, 1, 1], [], []>} : vector<18x8xf32>, vector<8x144xf32>, vector<18x144xf32> -> vector<18x144xf32>
    %53 = vector.extract_strided_slice %52 {offsets = [0, 0], sizes = [16, 144], strides = [1, 1]} : vector<18x144xf32> to vector<16x144xf32>
    %54 = vector.extract_strided_slice %52 {offsets = [1, 0], sizes = [16, 144], strides = [1, 1]} : vector<18x144xf32> to vector<16x144xf32>
    %55 = vector.extract_strided_slice %52 {offsets = [2, 0], sizes = [16, 144], strides = [1, 1]} : vector<18x144xf32> to vector<16x144xf32>
    %56 = vector.extract_strided_slice %18 {offsets = [0, 0], sizes = [16, 144], strides = [1, 1]} : vector<18x144xf32> to vector<16x144xf32>
    %57 = vector.extract_strided_slice %18 {offsets = [1, 0], sizes = [16, 144], strides = [1, 1]} : vector<18x144xf32> to vector<16x144xf32>
    %58 = vector.extract_strided_slice %18 {offsets = [2, 0], sizes = [16, 144], strides = [1, 1]} : vector<18x144xf32> to vector<16x144xf32>
    %59 = tpu.concatenate %53, %54, %55, %56, %57, %58 in 1 : vector<16x144xf32>, vector<16x144xf32>, vector<16x144xf32>, vector<16x144xf32>, vector<16x144xf32>, vector<16x144xf32> -> vector<16x864xf32>
    %60 = arith.truncf %59 : vector<16x864xf32> to vector<16x864xbf16>
    %c0_34 = arith.constant 0 : index
    %c0_35 = arith.constant 0 : index
    %61 = vector.load %arg14[%c0_34, %c0_35] : memref<864x128xbf16, #tpu.memory_space<vmem>>, vector<864x128xbf16>
    %cst_36 = arith.constant dense<0.000000e+00> : vector<16x128xf32>
    %62 = tpu.matmul %60, %61, %cst_36 {dimension_numbers = #tpu.dot_dimension_numbers<[1], [0], [0], [1], [0, 0, 1, 1], [], []>} : vector<16x864xbf16>, vector<864x128xbf16>, vector<16x128xf32> -> vector<16x128xf32>
    %c0_37 = arith.constant 0 : index
    %c0_38 = arith.constant 0 : index
    %63 = vector.load %arg15[%c0_37, %c0_38] : memref<1x128xf32, #tpu.memory_space<vmem>>, vector<1x128xf32>
    %64 = vector.broadcast %63 : vector<1x128xf32> to vector<16x128xf32>
    %65 = arith.mulf %62, %64 : vector<16x128xf32>
    %c0_39 = arith.constant 0 : index
    %c0_40 = arith.constant 0 : index
    %66 = vector.load %arg16[%c0_39, %c0_40] : memref<1x128xf32, #tpu.memory_space<vmem>>, vector<1x128xf32>
    %67 = vector.broadcast %66 : vector<1x128xf32> to vector<16x128xf32>
    %68 = arith.addf %65, %67 : vector<16x128xf32>
    %c0_41 = arith.constant 0 : index
    %c0_42 = arith.constant 0 : index
    %c0_43 = arith.constant 0 : index
    %69 = vector.load %arg17[%c0_41, %c0_42, %c0_43] : memref<1x16x128xf32, #tpu.memory_space<vmem>>, vector<1x16x128xf32>
    %70 = vector.shape_cast %69 : vector<1x16x128xf32> to vector<16x128xf32>
    %71 = vector.shape_cast %68 : vector<16x128xf32> to vector<1x16x128xf32>
    tpu.vector_store %arg17[%c0_41, %c0_42, %c0_43], %71 {strides = array<i32>} : memref<1x16x128xf32, #tpu.memory_space<vmem>>, vector<1x16x128xf32>,
    return
  }
  func.func @transform_0(%arg0: i32) -> (i32, i32, i32) {
    %c0_i32 = arith.constant 0 : i32
    %c0_i32_0 = arith.constant 0 : i32
    %c0_i32_1 = arith.constant 0 : i32
    return %arg0, %c0_i32, %c0_i32_0 : i32, i32, i32
  }
  func.func @transform_1(%arg0: i32) -> (i32, i32) {
    %c0_i32 = arith.constant 0 : i32
    %c0_i32_0 = arith.constant 0 : i32
    %c0_i32_1 = arith.constant 0 : i32
    return %c0_i32, %c0_i32_0 : i32, i32
  }
  func.func @transform_2(%arg0: i32) -> (i32, i32) {
    %c0_i32 = arith.constant 0 : i32
    %c0_i32_0 = arith.constant 0 : i32
    %c0_i32_1 = arith.constant 0 : i32
    return %c0_i32, %c0_i32_0 : i32, i32
  }
  func.func @transform_3(%arg0: i32) -> (i32, i32) {
    %c0_i32 = arith.constant 0 : i32
    %c0_i32_0 = arith.constant 0 : i32
    %c0_i32_1 = arith.constant 0 : i32
    return %c0_i32, %c0_i32_0 : i32, i32
  }
  func.func @transform_4(%arg0: i32) -> (i32, i32) {
    %c0_i32 = arith.constant 0 : i32
    %c0_i32_0 = arith.constant 0 : i32
    %c0_i32_1 = arith.constant 0 : i32
    return %c0_i32, %c0_i32_0 : i32, i32
  }
  func.func @transform_5(%arg0: i32) -> (i32, i32) {
    %c0_i32 = arith.constant 0 : i32
    %c0_i32_0 = arith.constant 0 : i32
    %c0_i32_1 = arith.constant 0 : i32
    return %c0_i32, %c0_i32_0 : i32, i32
  }
  func.func @transform_6(%arg0: i32) -> (i32, i32) {
    %c0_i32 = arith.constant 0 : i32
    %c0_i32_0 = arith.constant 0 : i32
    %c0_i32_1 = arith.constant 0 : i32
    return %c0_i32, %c0_i32_0 : i32, i32
  }
  func.func @transform_7(%arg0: i32) -> (i32, i32) {
    %c0_i32 = arith.constant 0 : i32
    %c0_i32_0 = arith.constant 0 : i32
    %c0_i32_1 = arith.constant 0 : i32
    return %c0_i32, %c0_i32_0 : i32, i32
  }
  func.func @transform_8(%arg0: i32) -> (i32, i32) {
    %c0_i32 = arith.constant 0 : i32
    %c0_i32_0 = arith.constant 0 : i32
    %c0_i32_1 = arith.constant 0 : i32
    return %c0_i32, %c0_i32_0 : i32, i32
  }
  func.func @transform_9(%arg0: i32) -> (i32, i32) {
    %c0_i32 = arith.constant 0 : i32
    %c0_i32_0 = arith.constant 0 : i32
    %c0_i32_1 = arith.constant 0 : i32
    return %c0_i32, %c0_i32_0 : i32, i32
  }
  func.func @transform_10(%arg0: i32) -> (i32, i32) {
    %c0_i32 = arith.constant 0 : i32
    %c0_i32_0 = arith.constant 0 : i32
    %c0_i32_1 = arith.constant 0 : i32
    return %c0_i32, %c0_i32_0 : i32, i32
  }
  func.func @transform_11(%arg0: i32) -> (i32, i32) {
    %c0_i32 = arith.constant 0 : i32
    %c0_i32_0 = arith.constant 0 : i32
    %c0_i32_1 = arith.constant 0 : i32
    return %c0_i32, %c0_i32_0 : i32, i32
  }
  func.func @transform_12(%arg0: i32) -> (i32, i32) {
    %c0_i32 = arith.constant 0 : i32
    %c0_i32_0 = arith.constant 0 : i32
    %c0_i32_1 = arith.constant 0 : i32
    return %c0_i32, %c0_i32_0 : i32, i32
  }
  func.func @transform_13(%arg0: i32) -> (i32, i32) {
    %c0_i32 = arith.constant 0 : i32
    %c0_i32_0 = arith.constant 0 : i32
    %c0_i32_1 = arith.constant 0 : i32
    return %c0_i32, %c0_i32_0 : i32, i32
  }
  func.func @transform_14(%arg0: i32) -> (i32, i32) {
    %c0_i32 = arith.constant 0 : i32
    %c0_i32_0 = arith.constant 0 : i32
    %c0_i32_1 = arith.constant 0 : i32
    return %c0_i32, %c0_i32_0 : i32, i32
  }
  func.func @transform_15(%arg0: i32) -> (i32, i32) {
    %c0_i32 = arith.constant 0 : i32
    %c0_i32_0 = arith.constant 0 : i32
    %c0_i32_1 = arith.constant 0 : i32
    return %c0_i32, %c0_i32_0 : i32, i32
  }
  func.func @transform_16(%arg0: i32) -> (i32, i32, i32) {
    %c0_i32 = arith.constant 0 : i32
    %c0_i32_0 = arith.constant 0 : i32
    %c0_i32_1 = arith.constant 0 : i32
    return %arg0, %c0_i32, %c0_i32_0 : i32, i32, i32
  }
}

</mosaic_0001>

<bundles_post_ra>
// kernel: _lambda_.1
= control target key start
LH: loop header
LB: loop body
LE: loop exit
PB: predicated region body
PF: predicated region fallthrough
CT: control target
= control target key end

     0   :  { %s3699_s21 = smov 0   ;;  %s4626_s0 = inlined_call_operand.vmem [shape: f32[2,18,72], index: 0, kind: input, shape index: {}]   ;;  %s4627_s1 = inlined_call_operand.vmem [shape: bf16[216,144], index: 1, kind: input, shape index: {}]   ;;  %s4628_s2 = inlined_call_operand.vmem [shape: f32[18,16], index: 2, kind: input, shape index: {}]   ;;  %s4629_s3 = inlined_call_operand.vmem [shape: f32[1,144], index: 3, kind: input, shape index: {}]   ;;  %s4630_s4 = inlined_call_operand.vmem [shape: f32[1,144], index: 4, kind: input, shape index: {}]   ;;  %s4631_s5 = inlined_call_operand.vmem [shape: bf16[432,160], index: 5, kind: input, shape index: {}]   ;;  %s4632_s6 = inlined_call_operand.vmem [shape: f32[10,16], index: 6, kind: input, shape index: {}]   ;;  %s4633_s7 = inlined_call_operand.vmem [shape: f32[1,160], index: 7, kind: input, shape index: {}]   ;;  %s4634_s8 = inlined_call_operand.vmem [shape: f32[1,160], index: 8, kind: input, shape index: {}]   ;;  %s4635_s9 = inlined_call_operand.vmem [shape: bf16[480,144], index: 9, kind: input, shape index: {}]   ;;  %s4636_s10 = inlined_call_operand.vmem [shape: f32[18,8], index: 10, kind: input, shape index: {}]   ;;  %s4637_s11 = inlined_call_operand.vmem [shape: f32[1,144], index: 11, kind: input, shape index: {}]   ;;  %s4638_s12 = inlined_call_operand.vmem [shape: f32[1,144], index: 12, kind: input, shape index: {}]   ;;  %s4639_s13 = inlined_call_operand.vmem [shape: bf16[864,128], index: 13, kind: input, shape index: {}]   ;;  %s4640_s14 = inlined_call_operand.vmem [shape: f32[1,128], index: 14, kind: input, shape index: {}]   ;;  %s4641_s15 = inlined_call_operand.vmem [shape: f32[1,128], index: 15, kind: input, shape index: {}]   ;;  %s4642_s16 = inlined_call_operand.vmem [shape: f32[2,16,128], index: 16, kind: output, shape index: {}]  }
   0x1   :  { %4643 = sst [smem:[#allocation2_spill]] %s4626_s0 }
   0x2 LB: > { %s2903_s22 = sadd.s32 4294967295, %s3604_s21   ;;  %p2907_p0 = scmp.ge.s32.totalorder %s3604_s21, 1  ;;  %s3604_s21 = sphi %s3699_s21, %s26_s21  }
   0x3   : > { %p462_p1 = scmp.lt.s32.totalorder %s3604_s21, 3 }
   0x5   : > { %p463_p2 = pnand %p2907_p0, %p462_p1 }
   0x6   : > { %p512_p3 = scmp.lt.s32.totalorder (!%p463_p2), %s2903_s22, 1  ;;  %v3332_v0 = vld [vmem:[%s4627_s1 + $0x4] ss:$8 sps:$4 sm:$0xff] (!%p463_p2)   ;;  %v3334_v1 = vld [vmem:[%s4627_s1] ss:$8 sps:$4 sm:$0xff] (!%p463_p2)   ;;  %s4644_s23 = sld [smem:[#allocation2_spill]] (!%p463_p2)  ;;  %v779_v58 = vlaneseq (!%p463_p2) }
   0x7   : > { %466 = sbr.rel (%p463_p2) target bundleno = 2231 (0x8b7), region = 84  ;;  %v3335_v2 = vld [vmem:[%s4627_s1 + $0x14] ss:$8 sps:$4 sm:$0xff] (!%p463_p2)   ;;  %734 = vmatprep.subr.bf16.mxu0 (!%p463_p2), %v3332_v0  ;;  %v3337_v3 = vld [vmem:[%s4627_s1 + $0x10] ss:$8 sps:$4 sm:$0xff] (!%p463_p2)   ;;  %vm529_vm0 = vcmask (!%p463_p2), 1046528  }
   0x8   : > { %735 = vmatpush1.bf16.msra.mxu0 (!%p463_p2), %v3334_v1  ;;  %v3338_v4 = vld [vmem:[%s4627_s1 + $0x24] ss:$8 sps:$4 sm:$0xff] (!%p463_p2)   ;;  %v3340_v5 = vld [vmem:[%s4627_s1 + $0x20] ss:$8 sps:$4 sm:$0xff] (!%p463_p2)   ;;  %vm541_vm1 = vcmask (!%p463_p2), 1045504   ;;  %s3606_s0 = smov (!%p463_p2), 72  }
   0x9   : > { %736 = vmatprep.subr.bf16.mxu0 (!%p463_p2), %v3335_v2  ;;  %v3341_v15 = vld [vmem:[%s4627_s1 + $0x34] ss:$8 sps:$4 sm:$0xff] (!%p463_p2)   ;;  %v3343_v21 = vld [vmem:[%s4627_s1 + $0x30] ss:$8 sps:$4 sm:$0xff] (!%p463_p2)   ;;  %v3344_v23 = vld [vmem:[%s4627_s1 + $0x44] ss:$8 sps:$4 sm:$0xff] (!%p463_p2)  }
   0xa   : > { %v3346_v24 = vld [vmem:[%s4627_s1 + $0x40] ss:$8 sps:$4 sm:$0xff] (!%p463_p2)   ;;  %v3347_v25 = vld [vmem:[%s4627_s1 + $0x54] ss:$8 sps:$4 sm:$0xff] (!%p463_p2)   ;;  %v3349_v26 = vld [vmem:[%s4627_s1 + $0x50] ss:$8 sps:$4 sm:$0xff] (!%p463_p2)  }
   0xb   : > { %v3350_v27 = vld [vmem:[%s4627_s1 + $0x64] ss:$8 sps:$4 sm:$0xff] (!%p463_p2)   ;;  %v3352_v28 = vld [vmem:[%s4627_s1 + $0x60] ss:$8 sps:$4 sm:$0xff] (!%p463_p2)   ;;  %v3353_v29 = vld [vmem:[%s4627_s1 + $0x74] ss:$8 sps:$4 sm:$0xff] (!%p463_p2)  }
   0xc   : > { %737 = vmatpush1.bf16.msra.mxu0 (!%p463_p2), %v3337_v3  ;;  %v3355_v30 = vld [vmem:[%s4627_s1 + $0x70] ss:$8 sps:$4 sm:$0xff] (!%p463_p2)   ;;  %v3356_v31 = vld [vmem:[%s4627_s1 + $0x84] ss:$8 sps:$4 sm:$0xff] (!%p463_p2)   ;;  %v3358_v32 = vld [vmem:[%s4627_s1 + $0x80] ss:$8 sps:$4 sm:$0xff] (!%p463_p2)  }
   0xd   : > { %738 = vmatprep.subr.bf16.mxu0 (!%p463_p2), %v3338_v4  ;;  %v3359_v33 = vld [vmem:[%s4627_s1 + $0x94] ss:$8 sps:$4 sm:$0xff] (!%p463_p2)   ;;  %v3361_v34 = vld [vmem:[%s4627_s1 + $0x90] ss:$8 sps:$4 sm:$0xff] (!%p463_p2)   ;;  %v3362_v35 = vld [vmem:[%s4627_s1 + $0xa4] ss:$8 sps:$4 sm:$0xff] (!%p463_p2)  }
   0xe   : > { %s4646_s22 = smov (!%p512_p3, %s2903_s22), 1  ;;  %v3364_v36 = vld [vmem:[%s4627_s1 + $0xa0] ss:$8 sps:$4 sm:$0xff]   ;;  %v3365_v37 = vld [vmem:[%s4627_s1 + $0xb4] ss:$8 sps:$4 sm:$0xff]   ;;  %vm727_vm2 = vcmask 1043456  }
   0xf   : > { %s3230_s29 = smul.u32 24, %s4646_s22  ;;  %v3367_v38 = vld [vmem:[%s4627_s1 + $0xb0] ss:$8 sps:$4 sm:$0xff]   ;;  %v3368_v39 = vld [vmem:[%s4627_s1 + $0xc4] ss:$8 sps:$4 sm:$0xff]   ;;  %vm553_vm3 = vcmask 588800  }
  0x10   : > { %739 = vmatpush1.bf16.msra.mxu0 %v3340_v5  ;;  %v587_v40 = vld [vmem:[%s4627_s1 + $0xd0] sm:$0xff]  ;;  %v3370_v41 = vld [vmem:[%s4627_s1 + $0xc0] ss:$8 sps:$4 sm:$0xff]   ;;  %vm556_vm4 = vcmask 130048   ;;  %vm723_vm5 = vcmask 719872   ;;  %v3608_v57 = vmov 0.0  }
  0x11   : > { %s516_s24 = scalar_lea.vmem %s4644_s23, %s3230_s29  ;;  %740 = vmatprep.subr.bf16.mxu0 %v3341_v15  ;;  %s3607_s23 = smov 16   ;;  %v2938_v42 = vcombine.high %v587_v40, %v587_v40  ;;  %v2937_v43 = vcombine.low %v587_v40, %v587_v40  ;;  %889 = vmatprep.mubr.f32.mxu1 %v3608_v57  ;;  %v780_v59 = vshrl.u32 %v779_v58, 7  ;;  %v777_v61 = vld [vmem:[%s4629_s3] sm:$0x3]  ;;  %v3394_v40 = vld [vmem:[%s4631_s5 + $0x70] ss:$8 sps:$4 sm:$0xff]  }
  0x12   : > { %v3731_v6 = vld [vmem:[%s516_s24] sm:$0xff]  ;;  %v3733_v7 = vld [vmem:[%s516_s24 + $0x8] sm:$0xff]  ;;  %v525_v8 = vld [vmem:[%s516_s24 + $0x10] sm:$0x3]  ;;  %s3609_s26 = smov 32   ;;  %vm956_vm6 = vcmask 261120  }
  0x13   : > { %v530_v9 = vrot.slane %v3731_v6, 1  ;;  %v531_v10 = vrot.slane %v3733_v7, 1  ;;  %v533_v11 = vrot.slane %v525_v8, 1  ;;  %v545_v12 = vrot.slane %v525_v8, 2  ;;  %v793_v63 = vld [vmem:[%s4630_s4] sm:$0x3] }
  0x14   : > { %v542_v13 = vrot.slane %v3731_v6, 2  ;;  %v543_v14 = vrot.slane %v3733_v7, 2  ;;  %741 = vmatpush1.bf16.msra.mxu0 %v3343_v21  ;;  %v729_v44 = vsel %vm727_vm2, %v2937_v43, 0  ;;  %v3813_v60 = vsub.s32 0, %v780_v59  ;;  %v3402_v43 = vld [vmem:[%s4631_s5 + $0x94] ss:$8 sps:$4 sm:$0xff]  }
  0x15   : > { %v532_v16 = vsel %vm529_vm0, %v530_v9, %v531_v10  ;;  %v534_v17 = vsel %vm529_vm0, %v531_v10, %v533_v11  ;;  %742 = vmatprep.subr.bf16.mxu0 %v3344_v23  ;;  %v3818_v62 = vsub.s32 1, %v780_v59  ;;  %v814_v23 = vld [vmem:[%s4628_s2 + $0x8] sm:$0xff]  ;;  %v3418_v59 = vld [vmem:[%s4631_s5 + $0xf0] ss:$8 sps:$4 sm:$0xff]   ;;  %vm1295_vm7 = vcmask 392192   ;;  %s3610_s18 = smov 64  }
  0x16   : > { %v3247_v18 = vpack.i.bf16 %v534_v17, %v532_v16  ;;  %v544_v19 = vsel %vm541_vm1, %v542_v13, %v543_v14  ;;  %v546_v20 = vsel %vm541_vm1, %v543_v14, %v545_v12  ;;  %v782_v0 = vrot.slane %v777_v61, %v3813_v60  ;;  %s3124_s27 = sshll.u32 %s4646_s22, 4 }
  0x17   : > { %v3252_v22 = vpack.i.bf16 %v546_v20, %v544_v19  ;;  %v786_v1 = vrot.slane %v777_v61, %v3818_v62  ;;  %v798_v2 = vrot.slane %v793_v63, %v3813_v60  ;;  %v802_v4 = vrot.slane %v793_v63, %v3818_v62  ;;  %s521_s17 = scalar_lea.vmem %s4642_s16, %s3124_s27 }
  0x18   : > { %3248 = vrot.lane.b32.xlu0 %v3247_v18, %s3606_s0  ;;  %743 = vmatpush1.bf16.msra.mxu0 %v3346_v24  ;;  %v815_v24 = vld [vmem:[%s4628_s2 + $0x10] sm:$0x3]  ;;  %vm1533_vm8 = vcmask 523264   ;;  %vm1903_vm9 = vcmask 785408   ;;  %vm2022_vm10 = vcmask 64512   ;;  %vm2205_vm11 = vcmask 654336  }
  0x19   : > { %744 = vmatprep.subr.bf16.mxu0 %v3347_v25  ;;  %v3373_v25 = vld [vmem:[%s4631_s5] ss:$8 sps:$4 sm:$0xff]   ;;  %vm3613_vm12 = vmmov 0  }
  0x1c   : > { %3253 = vrot.lane.b32.xlu0 %v3252_v22, %s3607_s23  ;;  %745 = vmatpush1.bf16.msra.mxu0 %v3349_v26  ;;  %v813_v22 = vld [vmem:[%s4628_s2] sm:$0xff] }
  0x1d   : > { %746 = vmatprep.subr.bf16.mxu0 %v3350_v27  ;;  %v3375_v26 = vld [vmem:[%s4631_s5 + $0x4] ss:$8 sps:$4 sm:$0xff]   ;;  %v3378_v27 = vld [vmem:[%s4631_s5 + $0x14] ss:$8 sps:$4 sm:$0xff]  }
  0x20   : > { %747 = vmatpush1.bf16.msra.mxu0 %v3352_v28  ;;  %v3376_v28 = vld [vmem:[%s4631_s5 + $0x10] ss:$8 sps:$4 sm:$0xff]  }
  0x21   : > { %748 = vmatprep.subr.bf16.mxu0 %v3353_v29  ;;  %v3381_v29 = vld [vmem:[%s4631_s5 + $0x24] ss:$8 sps:$4 sm:$0xff]  }
  0x24   : > { %749 = vmatpush1.bf16.msra.mxu0 %v3355_v30  ;;  %v3379_v30 = vld [vmem:[%s4631_s5 + $0x20] ss:$8 sps:$4 sm:$0xff]  }
  0x25   : > { %750 = vmatprep.subr.bf16.mxu0 %v3356_v31  ;;  %v3384_v31 = vld [vmem:[%s4631_s5 + $0x34] ss:$8 sps:$4 sm:$0xff]  }
  0x28   : > { %751 = vmatpush1.bf16.msra.mxu0 %v3358_v32  ;;  %v3382_v32 = vld [vmem:[%s4631_s5 + $0x30] ss:$8 sps:$4 sm:$0xff]  }
  0x29   : > { %752 = vmatprep.subr.bf16.mxu0 %v3359_v33  ;;  %v3387_v33 = vld [vmem:[%s4631_s5 + $0x44] ss:$8 sps:$4 sm:$0xff]  }
  0x2c   : > { %753 = vmatpush1.bf16.msra.mxu0 %v3361_v34  ;;  %v3385_v34 = vld [vmem:[%s4631_s5 + $0x40] ss:$8 sps:$4 sm:$0xff]  }
  0x2d   : > { %754 = vmatprep.subr.bf16.mxu0 %v3362_v35  ;;  %v3390_v35 = vld [vmem:[%s4631_s5 + $0x54] ss:$8 sps:$4 sm:$0xff]  }
  0x30   : > { %755 = vmatpush1.bf16.msra.mxu0 %v3364_v36  ;;  %v3388_v36 = vld [vmem:[%s4631_s5 + $0x50] ss:$8 sps:$4 sm:$0xff]  }
  0x31   : > { %756 = vmatprep.subr.bf16.mxu0 %v3365_v37  ;;  %v3393_v37 = vld [vmem:[%s4631_s5 + $0x64] ss:$8 sps:$4 sm:$0xff]  }
  0x34   : > { %757 = vmatpush1.bf16.msra.mxu0 %v3367_v38  ;;  %v3391_v38 = vld [vmem:[%s4631_s5 + $0x60] ss:$8 sps:$4 sm:$0xff]  }
  0x35   : > { %758 = vmatprep.subr.bf16.mxu0 %v3368_v39  ;;  %v3396_v39 = vld [vmem:[%s4631_s5 + $0x74] ss:$8 sps:$4 sm:$0xff]  }
  0x38   : > { %759 = vmatpush1.bf16.msra.mxu0 %v3370_v41  ;;  %v3399_v41 = vld [vmem:[%s4631_s5 + $0x84] ss:$8 sps:$4 sm:$0xff]  }
  0x39   : > { %2939 = vmatprep.subr.msk.bf16.mxu0 %vm727_vm2, %v2938_v42  ;;  %v3397_v42 = vld [vmem:[%s4631_s5 + $0x80] ss:$8 sps:$4 sm:$0xff]  }
  0x3c   : > { %761 = vmatpush1.bf16.msra.mxu0 %v729_v44  ;;  %v3400_v44 = vld [vmem:[%s4631_s5 + $0x90] ss:$8 sps:$4 sm:$0xff]  }
  0x8a   : > { %v3249_v45 = vpop.permute.xlu0 %3248 }
  0x8b   : > { %v3251_v46 = vunpack.i.h.bf16 %v3249_v45  ;;  %v3250_v47 = vunpack.i.l.bf16 %v3249_v45  ;;  %v3405_v45 = vld [vmem:[%s4631_s5 + $0xa4] ss:$8 sps:$4 sm:$0xff]  }
  0x8d   : > { %v554_v51 = vsel %vm553_vm3, %v3731_v6, %v3250_v47  ;;  %v555_v52 = vsel %vm553_vm3, %v3733_v7, %v3251_v46 }
  0x8e   : > { %v3254_v48 = vpop.permute.xlu0 %3253  ;;  %v559_v56 = vpack.c.bf16 %v555_v52, %v554_v51  ;;  %v3414_v51 = vld [vmem:[%s4631_s5 + $0xd4] ss:$8 sps:$4 sm:$0xff]   ;;  %v3412_v52 = vld [vmem:[%s4631_s5 + $0xd0] ss:$8 sps:$4 sm:$0xff]  }
  0x8f   : > { %v3256_v49 = vunpack.i.h.bf16 %v3254_v48  ;;  %v3255_v50 = vunpack.i.l.bf16 %v3254_v48  ;;  %v3406_v48 = vld [vmem:[%s4631_s5 + $0xb0] ss:$8 sps:$4 sm:$0xff]  }
  0x91   : > { %v557_v53 = vsel %vm556_vm4, %v3250_v47, %v3255_v50  ;;  %v558_v54 = vsel %vm556_vm4, %v3251_v46, %v3256_v49  ;;  %v3403_v46 = vld [vmem:[%s4631_s5 + $0xa0] ss:$8 sps:$4 sm:$0xff]   ;;  %v3408_v47 = vld [vmem:[%s4631_s5 + $0xb4] ss:$8 sps:$4 sm:$0xff]   ;;  %v3411_v49 = vld [vmem:[%s4631_s5 + $0xc4] ss:$8 sps:$4 sm:$0xff]  }
  0x92   : > { %v560_v55 = vpack.c.bf16 %v558_v54, %v557_v53  ;;  %v3409_v50 = vld [vmem:[%s4631_s5 + $0xc0] ss:$8 sps:$4 sm:$0xff]   ;;  %v3417_v53 = vld [vmem:[%s4631_s5 + $0xe4] ss:$8 sps:$4 sm:$0xff]  }
  0x93   : > { %v3415_v54 = vld [vmem:[%s4631_s5 + $0xe0] ss:$8 sps:$4 sm:$0xff]  }
  0x94   : > { %2940 = vmatprep.mubr.msk.bf16.mxu0 %vm723_vm5, %v560_v55 }
  0x95   : > { %767 = vmatmul.mubr.bf16.vlgmr.msra.gmra.mrb[0].mxu0 %v559_v56  ;;  %v3420_v56 = vld [vmem:[%s4631_s5 + $0xf4] ss:$8 sps:$4 sm:$0xff]  }
  0x96   : > { %1493 = vmatprep.mubr.f32.mxu0 %v3608_v57 }
 0x168   : > { %v768_v3 = vpop.f32.mrb[0].mxu0 }
 0x169   : > { %v789_v5 = vmul.f32 %v782_v0, %v768_v3  ;;  %v770_v6 = vpop.f32.mrb[1].mxu0 }
 0x16a   : > { %v790_v7 = vmul.f32 %v786_v1, %v770_v6  ;;  %v772_v8 = vpop.f32.mrb[2].mxu0 }
 0x16b   : > { %v805_v9 = vadd.f32 %v798_v2, %v789_v5  ;;  %v791_v10 = vmul.f32 %v782_v0, %v772_v8  ;;  %v774_v11 = vpop.f32.mrb[3].mxu0 }
 0x16c   : > { %v792_v12 = vmul.f32 %v786_v1, %v774_v11  ;;  %v806_v13 = vadd.f32 %v802_v4, %v790_v7 }
 0x16d   : > { %v807_v14 = vadd.f32 %v798_v2, %v791_v10  ;;  %v809_v16 = vmax.f32 %v805_v9, 0.0  ;;  %v3423_v2 = vld [vmem:[%s4631_s5 + $0x104] ss:$8 sps:$4 sm:$0xff]  }
 0x16e   : > { %v808_v15 = vadd.f32 %v802_v4, %v792_v12  ;;  %v810_v18 = vmax.f32 %v806_v13, 0.0 }
 0x16f   : > { %v811_v17 = vmax.f32 %v807_v14, 0.0 }
 0x170   : > { %v812_v19 = vmax.f32 %v808_v15, 0.0 }
 0x171   : > { %v3216_v20 = vpack.c.bf16 %v811_v17, %v809_v16 }
 0x172   : > { %v3214_v21 = vpack.c.bf16 %v812_v19, %v810_v18 }
 0x174   : > { %3215 = vmatprep.subr.bf16.mxu1 %v3214_v21 }
 0x175   : > { %3217 = vmatpush1.bf16.msra.mxu1 %v3216_v20 }
 0x176   : > { %1299 = vmatprep.subr.bf16.mxu1 %v3375_v26 }
 0x178   : > { %2941 = vmatmul.mubr.msk.f32.vlgmr.msra.gmra.mrb[0].mxu1 %vm556_vm4, %v813_v22 }
 0x179   : > { %895 = vmatprep.mubr.f32.mxu1 %v3608_v57  ;;  %1300 = vmatpush1.bf16.msra.mxu1 %v3373_v25 }
 0x17a   : > { %1301 = vmatprep.subr.bf16.mxu1 %v3378_v27 }
 0x17c   : > { %2942 = vmatmul.mubr.msk.f32.gmra.mrb[2].mxu1 %vm556_vm4, %v814_v23 }
 0x17d   : > { %901 = vmatprep.mubr.f32.mxu1 %v3608_v57  ;;  %1302 = vmatpush1.bf16.msra.mxu1 %v3376_v28 }
 0x17e   : > { %1303 = vmatprep.subr.bf16.mxu1 %v3381_v29 }
 0x180   : > { %2943 = vmatmul.mubr.msk.f32.gmra.mrb[4].mxu1 %vm556_vm4, %v815_v24 }
 0x181   : > { %1304 = vmatpush1.bf16.msra.mxu1 %v3379_v30 }
 0x182   : > { %1305 = vmatprep.subr.bf16.mxu1 %v3384_v31 }
 0x185   : > { %1306 = vmatpush1.bf16.msra.mxu1 %v3382_v32 }
 0x186   : > { %1307 = vmatprep.subr.bf16.mxu1 %v3387_v33 }
 0x189   : > { %1308 = vmatpush1.bf16.msra.mxu1 %v3385_v34 }
 0x18a   : > { %1309 = vmatprep.subr.bf16.mxu1 %v3390_v35 }
 0x18d   : > { %1310 = vmatpush1.bf16.msra.mxu1 %v3388_v36 }
 0x18e   : > { %1311 = vmatprep.subr.bf16.mxu1 %v3393_v37 }
 0x191   : > { %1312 = vmatpush1.bf16.msra.mxu1 %v3391_v38 }
 0x192   : > { %1313 = vmatprep.subr.bf16.mxu1 %v3396_v39 }
 0x195   : > { %1314 = vmatpush1.bf16.msra.mxu1 %v3394_v40 }
 0x196   : > { %1315 = vmatprep.subr.bf16.mxu1 %v3399_v41 }
 0x199   : > { %1316 = vmatpush1.bf16.msra.mxu1 %v3397_v42  ;;  %v3421_v42 = vld [vmem:[%s4631_s5 + $0x100] ss:$8 sps:$4 sm:$0xff]  }
 0x19a   : > { %1317 = vmatprep.subr.bf16.mxu1 %v3402_v43  ;;  %v3426_v43 = vld [vmem:[%s4631_s5 + $0x114] ss:$8 sps:$4 sm:$0xff]  }
 0x19d   : > { %1318 = vmatpush1.bf16.msra.mxu1 %v3400_v44 }
 0x19e   : > { %1319 = vmatprep.subr.bf16.mxu1 %v3405_v45 }
 0x1a1   : > { %1320 = vmatpush1.bf16.msra.mxu1 %v3403_v46 }
 0x1a2   : > { %1321 = vmatprep.subr.bf16.mxu1 %v3408_v47  ;;  %v3424_v47 = vld [vmem:[%s4631_s5 + $0x110] ss:$8 sps:$4 sm:$0xff]  }
 0x1a5   : > { %1322 = vmatpush1.bf16.msra.mxu1 %v3406_v48 }
 0x1a6   : > { %1323 = vmatprep.subr.bf16.mxu1 %v3411_v49 }
 0x1a9   : > { %1324 = vmatpush1.bf16.msra.mxu1 %v3409_v50  ;;  %v3429_v50 = vld [vmem:[%s4631_s5 + $0x124] ss:$8 sps:$4 sm:$0xff]  }
 0x1aa   : > { %1325 = vmatprep.subr.bf16.mxu1 %v3414_v51 }
 0x1ad   : > { %1326 = vmatpush1.bf16.msra.mxu1 %v3412_v52 }
 0x1ae   : > { %1327 = vmatprep.subr.bf16.mxu1 %v3417_v53 }
 0x1b1   : > { %1328 = vmatpush1.bf16.msra.mxu1 %v3415_v54  ;;  %v3427_v54 = vld [vmem:[%s4631_s5 + $0x120] ss:$8 sps:$4 sm:$0xff]  }
 0x1b2   : > { %1329 = vmatprep.subr.bf16.mxu1 %v3420_v56  ;;  %v3432_v56 = vld [vmem:[%s4631_s5 + $0x134] ss:$8 sps:$4 sm:$0xff]  }
 0x1b5   : > { %1330 = vmatpush1.bf16.msra.mxu1 %v3418_v59  ;;  %v3430_v59 = vld [vmem:[%s4631_s5 + $0x130] ss:$8 sps:$4 sm:$0xff]  }
 0x1b6   : > { %1342 = vmatprep.subr.bf16.mxu1 %v3423_v2  ;;  %v3436_v2 = vld [vmem:[%s4631_s5 + $0x150] ss:$8 sps:$4 sm:$0xff]  }
 0x24b   : > { %v3931_v55 = vpop.f32.mrb[0].mxu1 }
 0x24c   : > { %v3936_v58 = vpop.f32.mrb[1].mxu1  ;;  %v914_v61 = vrot.slane %v3931_v55, 1  ;;  %v938_v63 = vrot.slane %v3931_v55, 2 }
 0x24d   : > { %v917_v0 = vrot.slane %v3936_v58, 1  ;;  %v941_v8 = vrot.slane %v3936_v58, 2 }
 0x24f   : > { %v3944_v1 = vpop.f32.mrb[2].mxu1 }
 0x250   : > { %v915_v3 = vrot.slane %v3944_v1, 1  ;;  %v939_v4 = vrot.slane %v3944_v1, 2  ;;  %v967_v5 = vpack.c.bf16 %v3944_v1, %v3931_v55  ;;  %v3953_v6 = vpop.f32.mrb[3].mxu1  ;;  %v3302_v7 = vpack.i.bf16 %v3944_v1, %v3931_v55 }
 0x251   : > { %v918_v9 = vrot.slane %v3953_v6, 1  ;;  %v942_v10 = vrot.slane %v3953_v6, 2  ;;  %v3317_v11 = vpack.i.bf16 %v3953_v6, %v3936_v58 }
 0x252   : > { %v3963_v12 = vsel %vm541_vm1, %v938_v63, %v939_v4  ;;  %v3966_v13 = vsel %vm529_vm0, %v914_v61, %v915_v3  ;;  %v3435_v61 = vld [vmem:[%s4631_s5 + $0x144] ss:$8 sps:$4 sm:$0xff]   ;;  %v3433_v63 = vld [vmem:[%s4631_s5 + $0x140] ss:$8 sps:$4 sm:$0xff]  }
 0x253   : > { %v903_v14 = vpop.f32.mrb[4].mxu1  ;;  %v3969_v15 = vsel %vm541_vm1, %v941_v8, %v942_v10  ;;  %v3972_v16 = vsel %vm529_vm0, %v917_v0, %v918_v9  ;;  %v3438_v0 = vld [vmem:[%s4631_s5 + $0x154] ss:$8 sps:$4 sm:$0xff]   ;;  %v3442_v8 = vld [vmem:[%s4631_s5 + $0x170] ss:$8 sps:$4 sm:$0xff]  }
 0x254   : > { %v920_v17 = vrot.slane %v903_v14, 1  ;;  %v944_v18 = vrot.slane %v903_v14, 2  ;;  %v905_v19 = vpop.f32.mrb[5].mxu1  ;;  %v3262_v20 = vpack.i.bf16 %v3969_v15, %v3963_v12  ;;  %v3307_v21 = vpack.i.bf16 %v3972_v16, %v3966_v13  ;;  %v3450_v14 = vld [vmem:[%s4631_s5 + $0x194] ss:$8 sps:$4 sm:$0xff]  }
 0x255   : > { %v922_v22 = vrot.slane %v905_v19, 1  ;;  %v946_v23 = vrot.slane %v905_v19, 2 }
 0x256   : > { %3263 = vrot.lane.b32.xlu0 %v3262_v20, %s3609_s26  ;;  %v3980_v24 = vsel %vm529_vm0, %v915_v3, %v920_v17  ;;  %v3983_v25 = vsel %vm541_vm1, %v939_v4, %v944_v18  ;;  %v3441_v3 = vld [vmem:[%s4631_s5 + $0x164] ss:$8 sps:$4 sm:$0xff]   ;;  %v3439_v4 = vld [vmem:[%s4631_s5 + $0x160] ss:$8 sps:$4 sm:$0xff]   ;;  %v3448_v17 = vld [vmem:[%s4631_s5 + $0x190] ss:$8 sps:$4 sm:$0xff]  }
 0x257   : > { %v3257_v26 = vpack.i.bf16 %v3980_v24, %v3966_v13  ;;  %v3988_v27 = vsel %vm529_vm0, %v918_v9, %v922_v22  ;;  %v3991_v28 = vsel %vm541_vm1, %v942_v10, %v946_v23  ;;  %v3322_v29 = vpack.i.bf16 %v3983_v25, %v3963_v12  ;;  %v3447_v9 = vld [vmem:[%s4631_s5 + $0x184] ss:$8 sps:$4 sm:$0xff]   ;;  %v3445_v10 = vld [vmem:[%s4631_s5 + $0x180] ss:$8 sps:$4 sm:$0xff]  }
 0x258   : > { %v3312_v30 = vpack.i.bf16 %v3988_v27, %v3980_v24  ;;  %v3267_v31 = vpack.i.bf16 %v3988_v27, %v3972_v16  ;;  %v3272_v32 = vpack.i.bf16 %v3991_v28, %v3983_v25  ;;  %v3327_v33 = vpack.i.bf16 %v3991_v28, %v3969_v15  ;;  %v3453_v20 = vld [vmem:[%s4631_s5 + $0x1a4] ss:$8 sps:$4 sm:$0xff]   ;;  %v3451_v22 = vld [vmem:[%s4631_s5 + $0x1a0] ss:$8 sps:$4 sm:$0xff]  }
 0x259   : > { %3258 = vrot.lane.b32.xlu1 %v3257_v26, %s3607_s23  ;;  %v3569_v16 = vld [vmem:[%s4639_s13 + $0x80] sm:$0xff]   ;;  %v3572_v24 = vld [vmem:[%s4639_s13 + $0xc8] sm:$0xff]  }
 0x25d   : > { %3268 = vrot.lane.b32.xlu1 %v3267_v31, %s3607_s23 }
 0x261   : > { %3273 = vrot.lane.b32.xlu1 %v3272_v32, %s3609_s26 }
 0x2c8   : > { %v4018_v39 = vpop.permute.xlu0 %3263 }
 0x2c9   : > { %v3266_v44 = vunpack.i.h.bf16 %v4018_v39  ;;  %v3265_v45 = vunpack.i.l.bf16 %v4018_v39 }
 0x2cb   : > { %v4006_v34 = vpop.permute.xlu1 %3258  ;;  %v957_v51 = vsel %vm956_vm6, %v3265_v45, %v3266_v44 }
 0x2cc   : > { %v3261_v35 = vunpack.i.h.bf16 %v4006_v34  ;;  %v3260_v36 = vunpack.i.l.bf16 %v4006_v34  ;;  %v1401_v34 = vld [vmem:[%s4634_s8] sm:$0x3] }
 0x2cd   : > { %v1406_v39 = vrot.slane %v1401_v34, %v3813_v60 }
 0x2ce   : > { %v963_v37 = vsel %vm556_vm4, %v3936_v58, %v3260_v36  ;;  %v964_v38 = vsel %vm556_vm4, %v3953_v6, %v3261_v35 }
 0x2cf   : > { %v3269_v40 = vpop.permute.xlu1 %3268  ;;  %v968_v41 = vpack.c.bf16 %v964_v38, %v963_v37  ;;  %v1385_v38 = vld [vmem:[%s4633_s7] sm:$0x3] }
 0x2d0   : > { %v3271_v18 = vunpack.i.h.bf16 %v3269_v40  ;;  %v3270_v19 = vunpack.i.l.bf16 %v3269_v40 }
 0x2d1   : > { %1331 = vmatprep.mubr.bf16.mxu1 %v968_v41  ;;  %v1410_v41 = vrot.slane %v1401_v34, %v3818_v62  ;;  %v3483_v34 = vld [vmem:[%s4635_s9 + $0x94] ss:$8 sps:$4 sm:$0xff]  }
 0x2d2   : > { %1332 = vmatmul.mubr.bf16.vlgmr.msra.gmra.mrb[8].mxu1 %v967_v5  ;;  %v3444_v5 = vld [vmem:[%s4631_s5 + $0x174] ss:$8 sps:$4 sm:$0xff]   ;;  %v933_v23 = vsel %vm556_vm4, %v3261_v35, %v3271_v18  ;;  %v932_v26 = vsel %vm556_vm4, %v3260_v36, %v3270_v19  ;;  %v1390_v35 = vrot.slane %v1385_v38, %v3813_v60  ;;  %v1394_v36 = vrot.slane %v1385_v38, %v3818_v62  ;;  %v3468_v18 = vld [vmem:[%s4635_s9 + $0x44] ss:$8 sps:$4 sm:$0xff]   ;;  %v3466_v19 = vld [vmem:[%s4635_s9 + $0x40] ss:$8 sps:$4 sm:$0xff]  }
 0x2d3   : > { %1343 = vmatpush1.bf16.msra.mxu1 %v3421_v42  ;;  %v3274_v46 = vpop.permute.xlu1 %3273  ;;  %v965_v32 = vsel %vm956_vm6, %v932_v26, %v3265_v45  ;;  %v3472_v26 = vld [vmem:[%s4635_s9 + $0x60] ss:$8 sps:$4 sm:$0xff]  }
 0x2d4   : > { %v3276_v48 = vunpack.i.h.bf16 %v3274_v46  ;;  %v3275_v49 = vunpack.i.l.bf16 %v3274_v46  ;;  %1344 = vmatprep.subr.bf16.mxu1 %v3426_v43  ;;  %v3478_v38 = vld [vmem:[%s4635_s9 + $0x80] ss:$8 sps:$4 sm:$0xff]  }
 0x2d6   : > { %v958_v52 = vsel %vm956_vm6, %v3275_v49, %v3276_v48  ;;  %v966_v31 = vsel %vm956_vm6, %v933_v23, %v3275_v49  ;;  %v3474_v23 = vld [vmem:[%s4635_s9 + $0x64] ss:$8 sps:$4 sm:$0xff]  }
 0x2d7   : > { %v970_v53 = vpack.c.bf16 %v958_v52, %v957_v51  ;;  %1345 = vmatpush1.bf16.msra.mxu1 %v3424_v47  ;;  %v969_v37 = vpack.c.bf16 %v966_v31, %v965_v32  ;;  %v3477_v31 = vld [vmem:[%s4635_s9 + $0x74] ss:$8 sps:$4 sm:$0xff]   ;;  %v3475_v32 = vld [vmem:[%s4635_s9 + $0x70] ss:$8 sps:$4 sm:$0xff]  }
 0x2d8   : > { %1346 = vmatprep.subr.bf16.mxu1 %v3429_v50 }
 0x2d9   : > { %2998 = vmatprep.mubr.msk.bf16.mxu1 %vm1295_vm7, %v970_v53 }
 0x2db   : > { %1347 = vmatpush1.bf16.msra.mxu1 %v3427_v54 }
 0x2dc   : > { %1348 = vmatprep.subr.bf16.mxu1 %v3432_v56 }
 0x2df   : > { %1349 = vmatpush1.bf16.msra.mxu1 %v3430_v59 }
 0x2e0   : > { %1350 = vmatprep.subr.bf16.mxu1 %v3435_v61 }
 0x2e3   : > { %1351 = vmatpush1.bf16.msra.mxu1 %v3433_v63 }
 0x2e4   : > { %1352 = vmatprep.subr.bf16.mxu1 %v3438_v0  ;;  %v1421_v0 = vld [vmem:[%s4632_s6] sm:$0xff] }
 0x2e7   : > { %1353 = vmatpush1.bf16.msra.mxu1 %v3436_v2  ;;  %v1422_v2 = vld [vmem:[%s4632_s6 + $0x8] sm:$0x3] }
 0x2e8   : > { %1354 = vmatprep.subr.bf16.mxu1 %v3441_v3  ;;  %v3454_v3 = vld [vmem:[%s4635_s9] ss:$8 sps:$4 sm:$0xff]  }
 0x2eb   : > { %1355 = vmatpush1.bf16.msra.mxu1 %v3439_v4  ;;  %v3456_v4 = vld [vmem:[%s4635_s9 + $0x4] ss:$8 sps:$4 sm:$0xff]  }
 0x2ec   : > { %1356 = vmatprep.subr.bf16.mxu1 %v3444_v5  ;;  %v3459_v5 = vld [vmem:[%s4635_s9 + $0x14] ss:$8 sps:$4 sm:$0xff]  }
 0x2ef   : > { %1357 = vmatpush1.bf16.msra.mxu1 %v3442_v8  ;;  %v3457_v8 = vld [vmem:[%s4635_s9 + $0x10] ss:$8 sps:$4 sm:$0xff]  }
 0x2f0   : > { %1358 = vmatprep.subr.bf16.mxu1 %v3447_v9  ;;  %v3462_v9 = vld [vmem:[%s4635_s9 + $0x24] ss:$8 sps:$4 sm:$0xff]  }
 0x2f3   : > { %1359 = vmatpush1.bf16.msra.mxu1 %v3445_v10  ;;  %v3460_v10 = vld [vmem:[%s4635_s9 + $0x20] ss:$8 sps:$4 sm:$0xff]  }
 0x2f4   : > { %1360 = vmatprep.subr.bf16.mxu1 %v3450_v14  ;;  %v3465_v14 = vld [vmem:[%s4635_s9 + $0x34] ss:$8 sps:$4 sm:$0xff]  }
 0x2f7   : > { %1361 = vmatpush1.bf16.msra.mxu1 %v3448_v17  ;;  %v3463_v17 = vld [vmem:[%s4635_s9 + $0x30] ss:$8 sps:$4 sm:$0xff]  }
 0x2f8   : > { %1362 = vmatprep.subr.bf16.mxu1 %v3453_v20  ;;  %v3471_v20 = vld [vmem:[%s4635_s9 + $0x54] ss:$8 sps:$4 sm:$0xff]  }
 0x2fb   : > { %1363 = vmatpush1.bf16.msra.mxu1 %v3451_v22  ;;  %v3469_v22 = vld [vmem:[%s4635_s9 + $0x50] ss:$8 sps:$4 sm:$0xff]  }
 0x2fe   : > { %1375 = vmatmul.mubr.bf16.vlgmr.msra.gmra.mrb[8].mxu1 %v969_v37  ;;  %v3480_v37 = vld [vmem:[%s4635_s9 + $0x84] ss:$8 sps:$4 sm:$0xff]  }
 0x2ff   : > { %2096 = vmatprep.mubr.f32.mxu1 %v3608_v57 }
 0x3d1   : > { %v1376_v40 = vpop.f32.mrb[8].mxu1 }
 0x3d2   : > { %v1397_v42 = vmul.f32 %v1390_v35, %v1376_v40  ;;  %v1378_v43 = vpop.f32.mrb[9].mxu1  ;;  %v3489_v40 = vld [vmem:[%s4635_s9 + $0xb4] ss:$8 sps:$4 sm:$0xff]  }
 0x3d3   : > { %v1398_v44 = vmul.f32 %v1394_v36, %v1378_v43  ;;  %v1380_v45 = vpop.f32.mrb[10].mxu1  ;;  %v3490_v43 = vld [vmem:[%s4635_s9 + $0xc0] ss:$8 sps:$4 sm:$0xff]  }
 0x3d4   : > { %v1413_v46 = vadd.f32 %v1406_v39, %v1397_v42  ;;  %v1399_v47 = vmul.f32 %v1390_v35, %v1380_v45  ;;  %v1382_v48 = vpop.f32.mrb[11].mxu1  ;;  %v3481_v35 = vld [vmem:[%s4635_s9 + $0x90] ss:$8 sps:$4 sm:$0xff]   ;;  %v3492_v42 = vld [vmem:[%s4635_s9 + $0xc4] ss:$8 sps:$4 sm:$0xff]  }
 0x3d5   : > { %v1414_v49 = vadd.f32 %v1410_v41, %v1398_v44  ;;  %v1400_v50 = vmul.f32 %v1394_v36, %v1382_v48  ;;  %v3486_v36 = vld [vmem:[%s4635_s9 + $0xa4] ss:$8 sps:$4 sm:$0xff]   ;;  %v3495_v44 = vld [vmem:[%s4635_s9 + $0xd4] ss:$8 sps:$4 sm:$0xff]   ;;  %v3493_v45 = vld [vmem:[%s4635_s9 + $0xd0] ss:$8 sps:$4 sm:$0xff]  }
 0x3d6   : > { %v1415_v51 = vadd.f32 %v1406_v39, %v1399_v47  ;;  %v1417_v53 = vmax.f32 %v1413_v46, 0.0  ;;  %v3484_v39 = vld [vmem:[%s4635_s9 + $0xa0] ss:$8 sps:$4 sm:$0xff]   ;;  %v3498_v46 = vld [vmem:[%s4635_s9 + $0xe4] ss:$8 sps:$4 sm:$0xff]  }
 0x3d7   : > { %v1416_v52 = vadd.f32 %v1410_v41, %v1400_v50  ;;  %v1418_v56 = vmax.f32 %v1414_v49, 0.0  ;;  %v3487_v41 = vld [vmem:[%s4635_s9 + $0xb0] ss:$8 sps:$4 sm:$0xff]   ;;  %v3496_v47 = vld [vmem:[%s4635_s9 + $0xe0] ss:$8 sps:$4 sm:$0xff]  }
 0x3d8   : > { %v1419_v54 = vmax.f32 %v1415_v51, 0.0  ;;  %v3501_v48 = vld [vmem:[%s4635_s9 + $0xf4] ss:$8 sps:$4 sm:$0xff]   ;;  %v3499_v49 = vld [vmem:[%s4635_s9 + $0xf0] ss:$8 sps:$4 sm:$0xff]  }
 0x3d9   : > { %v1420_v59 = vmax.f32 %v1416_v52, 0.0  ;;  %v3504_v50 = vld [vmem:[%s4635_s9 + $0x104] ss:$8 sps:$4 sm:$0xff]  }
 0x3da   : > { %v3220_v61 = vpack.c.bf16 %v1419_v54, %v1417_v53 }
 0x3db   : > { %v3218_v63 = vpack.c.bf16 %v1420_v59, %v1418_v56 }
 0x3dd   : > { %3219 = vmatprep.subr.bf16.mxu0 %v3218_v63 }
 0x3de   : > { %3221 = vmatpush1.bf16.msra.mxu0 %v3220_v61 }
 0x3df   : > { %1907 = vmatprep.subr.bf16.mxu0 %v3456_v4 }
 0x3e1   : > { %2999 = vmatmul.mubr.msk.f32.vlgmr.msra.gmra.mrb[4].mxu0 %vm556_vm4, %v1421_v0 }
 0x3e2   : > { %1499 = vmatprep.mubr.f32.mxu0 %v3608_v57  ;;  %1908 = vmatpush1.bf16.msra.mxu0 %v3454_v3 }
 0x3e3   : > { %1909 = vmatprep.subr.bf16.mxu0 %v3459_v5 }
 0x3e5   : > { %3000 = vmatmul.mubr.msk.f32.gmra.mrb[6].mxu0 %vm556_vm4, %v1422_v2 }
 0x3e6   : > { %1910 = vmatpush1.bf16.msra.mxu0 %v3457_v8 }
 0x3e7   : > { %1911 = vmatprep.subr.bf16.mxu0 %v3462_v9 }
 0x3ea   : > { %1912 = vmatpush1.bf16.msra.mxu0 %v3460_v10 }
 0x3eb   : > { %1913 = vmatprep.subr.bf16.mxu0 %v3465_v14 }
 0x3ee   : > { %1914 = vmatpush1.bf16.msra.mxu0 %v3463_v17 }
 0x3ef   : > { %1915 = vmatprep.subr.bf16.mxu0 %v3468_v18 }
 0x3f2   : > { %1916 = vmatpush1.bf16.msra.mxu0 %v3466_v19 }
 0x3f3   : > { %1917 = vmatprep.subr.bf16.mxu0 %v3471_v20  ;;  %v3502_v20 = vld [vmem:[%s4635_s9 + $0x100] ss:$8 sps:$4 sm:$0xff]  }
 0x3f6   : > { %1918 = vmatpush1.bf16.msra.mxu0 %v3469_v22 }
 0x3f7   : > { %1919 = vmatprep.subr.bf16.mxu0 %v3474_v23  ;;  %v3507_v23 = vld [vmem:[%s4635_s9 + $0x114] ss:$8 sps:$4 sm:$0xff]  }
 0x3fa   : > { %1920 = vmatpush1.bf16.msra.mxu0 %v3472_v26 }
 0x3fb   : > { %1921 = vmatprep.subr.bf16.mxu0 %v3477_v31 }
 0x3fe   : > { %1922 = vmatpush1.bf16.msra.mxu0 %v3475_v32 }
 0x3ff   : > { %1923 = vmatprep.subr.bf16.mxu0 %v3480_v37  ;;  %v3505_v37 = vld [vmem:[%s4635_s9 + $0x110] ss:$8 sps:$4 sm:$0xff]  }
 0x402   : > { %1924 = vmatpush1.bf16.msra.mxu0 %v3478_v38 }
 0x403   : > { %1925 = vmatprep.subr.bf16.mxu0 %v3483_v34  ;;  %v3510_v34 = vld [vmem:[%s4635_s9 + $0x124] ss:$8 sps:$4 sm:$0xff]  }
 0x406   : > { %1926 = vmatpush1.bf16.msra.mxu0 %v3481_v35 }
 0x407   : > { %1927 = vmatprep.subr.bf16.mxu0 %v3486_v36  ;;  %v3508_v36 = vld [vmem:[%s4635_s9 + $0x120] ss:$8 sps:$4 sm:$0xff]  }
 0x40a   : > { %1928 = vmatpush1.bf16.msra.mxu0 %v3484_v39  ;;  %v3513_v39 = vld [vmem:[%s4635_s9 + $0x134] ss:$8 sps:$4 sm:$0xff]  }
 0x40b   : > { %1929 = vmatprep.subr.bf16.mxu0 %v3489_v40  ;;  %v3511_v40 = vld [vmem:[%s4635_s9 + $0x130] ss:$8 sps:$4 sm:$0xff]  }
 0x40e   : > { %1930 = vmatpush1.bf16.msra.mxu0 %v3487_v41  ;;  %v3516_v41 = vld [vmem:[%s4635_s9 + $0x144] ss:$8 sps:$4 sm:$0xff]  }
 0x40f   : > { %1931 = vmatprep.subr.bf16.mxu0 %v3492_v42  ;;  %v3514_v42 = vld [vmem:[%s4635_s9 + $0x140] ss:$8 sps:$4 sm:$0xff]  }
 0x412   : > { %1932 = vmatpush1.bf16.msra.mxu0 %v3490_v43  ;;  %v3519_v43 = vld [vmem:[%s4635_s9 + $0x154] ss:$8 sps:$4 sm:$0xff]  }
 0x413   : > { %1933 = vmatprep.subr.bf16.mxu0 %v3495_v44  ;;  %v3517_v44 = vld [vmem:[%s4635_s9 + $0x150] ss:$8 sps:$4 sm:$0xff]  }
 0x416   : > { %1934 = vmatpush1.bf16.msra.mxu0 %v3493_v45  ;;  %v3522_v45 = vld [vmem:[%s4635_s9 + $0x164] ss:$8 sps:$4 sm:$0xff]  }
 0x417   : > { %1935 = vmatprep.subr.bf16.mxu0 %v3498_v46  ;;  %v3520_v46 = vld [vmem:[%s4635_s9 + $0x160] ss:$8 sps:$4 sm:$0xff]  }
 0x41a   : > { %1936 = vmatpush1.bf16.msra.mxu0 %v3496_v47  ;;  %v3525_v47 = vld [vmem:[%s4635_s9 + $0x174] ss:$8 sps:$4 sm:$0xff]  }
 0x41b   : > { %1937 = vmatprep.subr.bf16.mxu0 %v3501_v48  ;;  %v3523_v48 = vld [vmem:[%s4635_s9 + $0x170] ss:$8 sps:$4 sm:$0xff]  }
 0x41e   : > { %1938 = vmatpush1.bf16.msra.mxu0 %v3499_v49  ;;  %v3528_v49 = vld [vmem:[%s4635_s9 + $0x184] ss:$8 sps:$4 sm:$0xff]  }
 0x41f   : > { %1948 = vmatprep.subr.bf16.mxu0 %v3504_v50  ;;  %v3526_v50 = vld [vmem:[%s4635_s9 + $0x180] ss:$8 sps:$4 sm:$0xff]  }
 0x4b4   : > { %v1495_v51 = vpop.f32.mrb[4].mxu0 }
 0x4b5   : > { %v1497_v52 = vpop.f32.mrb[5].mxu0  ;;  %v1510_v54 = vrot.slane %v1495_v51, 1  ;;  %v1523_v56 = vrot.slane %v1495_v51, 2  ;;  %v1539_v22 = vpack.c.bf16 %v1495_v51, %v1495_v51  ;;  %v3531_v51 = vld [vmem:[%s4635_s9 + $0x194] ss:$8 sps:$4 sm:$0xff]  }
 0x4b6   : > { %v1513_v0 = vrot.slane %v1497_v52, 1  ;;  %v1526_v2 = vrot.slane %v1497_v52, 2 }
 0x4b8   : > { %v1501_v53 = vpop.f32.mrb[6].mxu0 }
 0x4b9   : > { %v1511_v59 = vrot.slane %v1501_v53, 1  ;;  %v1524_v61 = vrot.slane %v1501_v53, 2  ;;  %v1503_v63 = vpop.f32.mrb[7].mxu0  ;;  %v3534_v53 = vld [vmem:[%s4635_s9 + $0x1a4] ss:$8 sps:$4 sm:$0xff]  }
 0x4ba   : > { %v1514_v3 = vrot.slane %v1503_v63, 1  ;;  %v1527_v4 = vrot.slane %v1503_v63, 2  ;;  %v3538_v63 = vld [vmem:[%s4635_s9 + $0x1c0] ss:$8 sps:$4 sm:$0xff]  }
 0x4bb   : > { %v1512_v5 = vsel %vm529_vm0, %v1510_v54, %v1511_v59  ;;  %v1525_v8 = vsel %vm541_vm1, %v1523_v56, %v1524_v61  ;;  %v3532_v54 = vld [vmem:[%s4635_s9 + $0x1a0] ss:$8 sps:$4 sm:$0xff]   ;;  %v3537_v56 = vld [vmem:[%s4635_s9 + $0x1b4] ss:$8 sps:$4 sm:$0xff]   ;;  %v3535_v59 = vld [vmem:[%s4635_s9 + $0x1b0] ss:$8 sps:$4 sm:$0xff]  }
 0x4bc   : > { %1516 = vrot.lane.b32.xlu0 %v1512_v5, %s3609_s26  ;;  %v1515_v9 = vsel %vm529_vm0, %v1513_v0, %v1514_v3  ;;  %v1528_v10 = vsel %vm541_vm1, %v1526_v2, %v1527_v4  ;;  %v3540_v61 = vld [vmem:[%s4635_s9 + $0x1c4] ss:$8 sps:$4 sm:$0xff]   ;;  %v3543_v0 = vld [vmem:[%s4635_s9 + $0x1d4] ss:$8 sps:$4 sm:$0xff]   ;;  %v3541_v3 = vld [vmem:[%s4635_s9 + $0x1d0] ss:$8 sps:$4 sm:$0xff]  }
 0x4bd   : > { %1518 = vrot.lane.b32.xlu1 %v1515_v9, %s3609_s26  ;;  %v3277_v14 = vpack.i.bf16 %v1528_v10, %v1525_v8  ;;  %v1989_v9 = vld [vmem:[%s4637_s11] sm:$0x3] }
 0x4be   : > { %v2003_v10 = vld [vmem:[%s4638_s12] sm:$0x3] }
 0x4c0   : > { %3278 = vrot.lane.b32.xlu0 %v3277_v14, %s3610_s18  ;;  %v1994_v14 = vrot.slane %v1989_v9, %v3813_v60 }
 0x52e   : > { %v4222_v17 = vpop.permute.xlu0 %1516 }
 0x52f   : > { %v1537_v18 = vsel %vm956_vm6, %v1497_v52, %v4222_v17  ;;  %v3529_v52 = vld [vmem:[%s4635_s9 + $0x190] ss:$8 sps:$4 sm:$0xff]   ;;  %v1519_v2 = vpop.permute.xlu1 %1518 }
 0x530   : > { %v1540_v19 = vpack.c.bf16 %v1537_v18, %v1537_v18  ;;  %v1520_v4 = vsel %vm956_vm6, %v4222_v17, %v1519_v2  ;;  %v1998_v18 = vrot.slane %v1989_v9, %v3818_v62  ;;  %v2008_v17 = vrot.slane %v2003_v10, %v3813_v60  ;;  %v2020_v60 = vld [vmem:[%s4636_s10 + $0x8] sm:$0xff]  ;;  %v3564_v2 = vld [vmem:[%s4639_s13 + $0x78] sm:$0xff]  }
 0x532   : > { %1939 = vmatprep.mubr.bf16.mxu0 %v1540_v19  ;;  %v4232_v26 = vpop.permute.xlu0 %3278 }
 0x533   : > { %v3281_v31 = vunpack.i.h.bf16 %v4232_v26  ;;  %v3280_v32 = vunpack.i.l.bf16 %v4232_v26  ;;  %1940 = vmatmul.mubr.bf16.vlgmr.msra.gmra.mrb[8].mxu0 %v1539_v22 }
 0x534   : > { %1949 = vmatpush1.bf16.msra.mxu0 %v3502_v20  ;;  %v2012_v20 = vrot.slane %v2003_v10, %v3818_v62  ;;  %v2021_v62 = vld [vmem:[%s4636_s10 + $0x10] sm:$0x3] }
 0x535   : > { %v1534_v38 = vsel %vm1533_vm8, %v3280_v32, %v3281_v31  ;;  %1950 = vmatprep.subr.bf16.mxu0 %v3507_v23  ;;  %v1538_v5 = vsel %vm1533_vm8, %v1520_v4, %v3280_v32  ;;  %v3565_v4 = vld [vmem:[%s4639_s13 + $0x38] sm:$0xff]  }
 0x536   : > { %v1542_v35 = vpack.c.bf16 %v1534_v38, %v1534_v38  ;;  %v1541_v8 = vpack.c.bf16 %v1538_v5, %v1538_v5  ;;  %v3566_v5 = vld [vmem:[%s4639_s13 + $0x158] sm:$0xff]  }
 0x538   : > { %1951 = vmatpush1.bf16.msra.mxu0 %v3505_v37  ;;  %3061 = vmatprep.mubr.msk.bf16.mxu0 %vm1903_vm9, %v1542_v35 }
 0x539   : > { %1952 = vmatprep.subr.bf16.mxu0 %v3510_v34 }
 0x53c   : > { %1953 = vmatpush1.bf16.msra.mxu0 %v3508_v36  ;;  %v2019_v36 = vld [vmem:[%s4636_s10] sm:$0xff] }
 0x53d   : > { %1954 = vmatprep.subr.bf16.mxu0 %v3513_v39  ;;  %v3544_v39 = vld [vmem:[%s4639_s13 + $0x40] sm:$0xff]  }
 0x540   : > { %1955 = vmatpush1.bf16.msra.mxu0 %v3511_v40  ;;  %v3545_v40 = vld [vmem:[%s4639_s13] sm:$0xff]  }
 0x541   : > { %1956 = vmatprep.subr.bf16.mxu0 %v3516_v41  ;;  %v3546_v41 = vld [vmem:[%s4639_s13 + $0x48] sm:$0xff]  }
 0x544   : > { %1957 = vmatpush1.bf16.msra.mxu0 %v3514_v42  ;;  %v3547_v42 = vld [vmem:[%s4639_s13 + $0x8] sm:$0xff]  }
 0x545   : > { %1958 = vmatprep.subr.bf16.mxu0 %v3519_v43  ;;  %v3554_v43 = vld [vmem:[%s4639_s13 + $0x140] sm:$0xff]  }
 0x548   : > { %1959 = vmatpush1.bf16.msra.mxu0 %v3517_v44  ;;  %v3555_v44 = vld [vmem:[%s4639_s13 + $0x100] sm:$0xff]  }
 0x549   : > { %1960 = vmatprep.subr.bf16.mxu0 %v3522_v45  ;;  %v3548_v45 = vld [vmem:[%s4639_s13 + $0x50] sm:$0xff]  }
 0x54c   : > { %1961 = vmatpush1.bf16.msra.mxu0 %v3520_v46  ;;  %v3558_v46 = vld [vmem:[%s4639_s13 + $0x148] sm:$0xff]  }
 0x54d   : > { %1962 = vmatprep.subr.bf16.mxu0 %v3525_v47  ;;  %v3559_v47 = vld [vmem:[%s4639_s13 + $0x108] sm:$0xff]  }
 0x550   : > { %1963 = vmatpush1.bf16.msra.mxu0 %v3523_v48  ;;  %v3549_v48 = vld [vmem:[%s4639_s13 + $0x10] sm:$0xff]  }
 0x551   : > { %1964 = vmatprep.subr.bf16.mxu0 %v3528_v49  ;;  %v3550_v49 = vld [vmem:[%s4639_s13 + $0x58] sm:$0xff]  }
 0x554   : > { %1965 = vmatpush1.bf16.msra.mxu0 %v3526_v50  ;;  %v3551_v50 = vld [vmem:[%s4639_s13 + $0x18] sm:$0xff]  }
 0x555   : > { %1966 = vmatprep.subr.bf16.mxu0 %v3531_v51  ;;  %v3552_v51 = vld [vmem:[%s4639_s13 + $0x60] sm:$0xff]  }
 0x558   : > { %1967 = vmatpush1.bf16.msra.mxu0 %v3529_v52  ;;  %v3553_v52 = vld [vmem:[%s4639_s13 + $0x20] sm:$0xff]  }
 0x559   : > { %1968 = vmatprep.subr.bf16.mxu0 %v3534_v53  ;;  %v3556_v53 = vld [vmem:[%s4639_s13 + $0x68] sm:$0xff]  }
 0x55c   : > { %1969 = vmatpush1.bf16.msra.mxu0 %v3532_v54  ;;  %v3557_v54 = vld [vmem:[%s4639_s13 + $0x28] sm:$0xff]  }
 0x55d   : > { %1970 = vmatprep.subr.bf16.mxu0 %v3537_v56  ;;  %v3560_v56 = vld [vmem:[%s4639_s13 + $0x70] sm:$0xff]  }
 0x560   : > { %1971 = vmatpush1.bf16.msra.mxu0 %v3535_v59  ;;  %v3561_v59 = vld [vmem:[%s4639_s13 + $0x30] sm:$0xff]  }
 0x561   : > { %1972 = vmatprep.subr.bf16.mxu0 %v3540_v61  ;;  %v3562_v61 = vld [vmem:[%s4639_s13 + $0x150] sm:$0xff]  }
 0x564   : > { %1973 = vmatpush1.bf16.msra.mxu0 %v3538_v63  ;;  %v3563_v63 = vld [vmem:[%s4639_s13 + $0x110] sm:$0xff]  }
 0x565   : > { %1974 = vmatprep.subr.bf16.mxu0 %v3543_v0 }
 0x568   : > { %1975 = vmatpush1.bf16.msra.mxu0 %v3541_v3 }
 0x569   : > { %3169 = vmatprep.subr.bf16.mxu0 %v3554_v43 }
 0x56b   : > { %1981 = vmatmul.mubr.bf16.vlgmr.msra.gmra.mrb[8].mxu0 %v1541_v8  ;;  %v3567_v8 = vld [vmem:[%s4639_s13 + $0x118] sm:$0xff]  }
 0x56c   : > { %3170 = vmatpush3.bf16.msra.mxu0 %v3555_v44 }
 0x56d   : > { %3171 = vmatprep.subr.bf16.mxu0 %v3558_v46 }
 0x570   : > { %3172 = vmatpush3.bf16.msra.mxu0 %v3559_v47 }
 0x571   : > { %3173 = vmatprep.subr.bf16.mxu0 %v3562_v61  ;;  %v3583_v61 = vld [vmem:[%s4639_s13 + $0x138] sm:$0xff]  }
 0x574   : > { %3174 = vmatpush3.bf16.msra.mxu0 %v3563_v63 }
 0x575   : > { %3175 = vmatprep.subr.bf16.mxu0 %v3566_v5 }
 0x578   : > { %3176 = vmatpush3.bf16.msra.mxu0 %v3567_v8 }
 0x63e   : > { %v1982_v19 = vpop.f32.mrb[8].mxu0 }
 0x63f   : > { %v2001_v22 = vmul.f32 %v1994_v14, %v1982_v19  ;;  %v1984_v23 = vpop.f32.mrb[9].mxu0  ;;  %v3568_v14 = vld [vmem:[%s4639_s13 + $0xc0] sm:$0xff]  }
 0x640   : > { %v2002_v26 = vmul.f32 %v1998_v18, %v1984_v23  ;;  %v1986_v31 = vpop.f32.mrb[10].mxu0 }
 0x641   : > { %v2015_v32 = vadd.f32 %v2008_v17, %v2001_v22  ;;  %v1987_v37 = vpop.f32.mrb[11].mxu0 }
 0x642   : > { %v2016_v38 = vadd.f32 %v2012_v20, %v2002_v26  ;;  %v3570_v37 = vld [vmem:[%s4639_s13 + $0x160] sm:$0xff]  }
 0x643   : > { %v2017_v35 = vmax.f32 %v2015_v32, 0.0  ;;  %3177 = vmatprep.subr.bf16.mxu0 %v3570_v37  ;;  %v3581_v37 = vld [vmem:[%s4639_s13 + $0x98] sm:$0xff]  }
 0x644   : > { %v2018_v34 = vmax.f32 %v2016_v38, 0.0 }
 0x646   : > { %2032 = vmatprep.subr.mxu1 %v2018_v34 }
 0x647   : > { %2033 = vmatpush1.msra.mxu1 %v2017_v35  ;;  %v3571_v35 = vld [vmem:[%s4639_s13 + $0x120] sm:$0xff]  }
 0x648   : > { %3062 = vmatmul.mubr.msk.f32.vlgmr.msra.gmra.mrb[6].mxu1 %vm2022_vm10, %v2019_v36  ;;  %3125 = vmatprep.subr.bf16.mxu1 %v3544_v39 }
 0x649   : > { %2102 = vmatprep.mubr.f32.mxu1 %v3608_v57  ;;  %3126 = vmatpush3.bf16.msra.mxu1 %v3545_v40 }
 0x64a   : > { %3127 = vmatprep.subr.bf16.mxu1 %v3546_v41  ;;  %3178 = vmatpush3.bf16.msra.mxu0 %v3571_v35 }
 0x64c   : > { %3063 = vmatmul.mubr.msk.f32.gmra.mrb[12].mxu1 %vm2022_vm10, %v2020_v60 }
 0x64d   : > { %2108 = vmatprep.mubr.f32.mxu1 %v3608_v57  ;;  %3128 = vmatpush3.bf16.msra.mxu1 %v3547_v42 }
 0x64e   : > { %3129 = vmatprep.subr.bf16.mxu1 %v3548_v45  ;;  %v3574_v45 = vld [vmem:[%s4639_s13 + $0x168] sm:$0xff]  }
 0x64f   : > { %3179 = vmatprep.subr.bf16.mxu0 %v3574_v45  ;;  %v3585_v45 = vld [vmem:[%s4639_s13 + $0xa0] sm:$0xff]  }
 0x650   : > { %3064 = vmatmul.mubr.msk.f32.gmra.mrb[14].mxu1 %vm2022_vm10, %v2021_v62 }
 0x651   : > { %3130 = vmatpush3.bf16.msra.mxu1 %v3549_v48  ;;  %v3575_v48 = vld [vmem:[%s4639_s13 + $0x128] sm:$0xff]  }
 0x652   : > { %3131 = vmatprep.subr.bf16.mxu1 %v3550_v49  ;;  %3180 = vmatpush3.bf16.msra.mxu0 %v3575_v48  ;;  %v3587_v48 = vld [vmem:[%s4639_s13 + $0xa8] sm:$0xff]  }
 0x655   : > { %3132 = vmatpush3.bf16.msra.mxu1 %v3551_v50 }
 0x656   : > { %3133 = vmatprep.subr.bf16.mxu1 %v3552_v51 }
 0x659   : > { %3134 = vmatpush3.bf16.msra.mxu1 %v3553_v52 }
 0x65a   : > { %3135 = vmatprep.subr.bf16.mxu1 %v3556_v53 }
 0x65d   : > { %3136 = vmatpush3.bf16.msra.mxu1 %v3557_v54  ;;  %v3578_v54 = vld [vmem:[%s4639_s13 + $0x170] sm:$0xff]  }
 0x65e   : > { %3137 = vmatprep.subr.bf16.mxu1 %v3560_v56  ;;  %v3579_v56 = vld [vmem:[%s4639_s13 + $0x130] sm:$0xff]   ;;  %3181 = vmatprep.subr.bf16.mxu0 %v3578_v54  ;;  %v3591_v54 = vld [vmem:[%s4639_s13 + $0xb8] sm:$0xff]  }
 0x65f   : > { %3182 = vmatpush3.bf16.msra.mxu0 %v3579_v56 }
 0x661   : > { %3138 = vmatpush3.bf16.msra.mxu1 %v3561_v59  ;;  %v3582_v59 = vld [vmem:[%s4639_s13 + $0x178] sm:$0xff]  }
 0x662   : > { %3139 = vmatprep.subr.bf16.mxu1 %v3564_v2  ;;  %3183 = vmatprep.subr.bf16.mxu0 %v3582_v59 }
 0x663   : > { %3184 = vmatpush3.bf16.msra.mxu0 %v3583_v61 }
 0x665   : > { %3140 = vmatpush3.bf16.msra.mxu1 %v3565_v4 }
 0x666   : > { %3147 = vmatprep.subr.bf16.mxu1 %v3568_v14 }
 0x71b   : > { %v4397_v0 = vpop.f32.mrb[6].mxu1 }
 0x71c   : > { %v4402_v3 = vpop.f32.mrb[7].mxu1  ;;  %v2121_v9 = vrot.slane %v4397_v0, 1  ;;  %v2145_v18 = vrot.slane %v4397_v0, 2 }
 0x71d   : > { %v2124_v23 = vrot.slane %v4402_v3, 1  ;;  %v2148_v26 = vrot.slane %v4402_v3, 2 }
 0x71f   : > { %v4414_v10 = vpop.f32.mrb[12].mxu1 }
 0x720   : > { %v2122_v17 = vrot.slane %v4414_v10, 1  ;;  %v2146_v19 = vrot.slane %v4414_v10, 2  ;;  %v2222_v20 = vpack.c.bf16 %v4414_v10, %v4397_v0  ;;  %v2106_v22 = vpop.f32.mrb[13].mxu1 }
 0x721   : > { %v2125_v31 = vrot.slane %v2106_v22, 1  ;;  %v2149_v32 = vrot.slane %v2106_v22, 2 }
 0x722   : > { %v2147_v38 = vsel %vm541_vm1, %v2145_v18, %v2146_v19  ;;  %v2123_v34 = vsel %vm529_vm0, %v2121_v9, %v2122_v17  ;;  %v3577_v18 = vld [vmem:[%s4639_s13 + $0x90] sm:$0xff]  }
 0x723   : > { %v2110_v36 = vpop.f32.mrb[14].mxu1  ;;  %v2150_v60 = vsel %vm541_vm1, %v2148_v26, %v2149_v32  ;;  %v2126_v62 = vsel %vm529_vm0, %v2124_v23, %v2125_v31 }
 0x724   : > { %v2127_v39 = vrot.slane %v2110_v36, 1  ;;  %v2151_v40 = vrot.slane %v2110_v36, 2  ;;  %v2112_v41 = vpop.f32.mrb[15].mxu1  ;;  %v3287_v42 = vpack.i.bf16 %v2150_v60, %v2147_v38  ;;  %v3584_v60 = vld [vmem:[%s4639_s13 + $0xe0] sm:$0xff]  }
 0x725   : > { %v2129_v43 = vrot.slane %v2112_v41, 1  ;;  %v2153_v44 = vrot.slane %v2112_v41, 2 }
 0x726   : > { %3288 = vrot.lane.b32.xlu0 %v3287_v42, %s3609_s26  ;;  %v2128_v46 = vsel %vm529_vm0, %v2122_v17, %v2127_v39  ;;  %v2152_v47 = vsel %vm541_vm1, %v2146_v19, %v2151_v40 }
 0x727   : > { %v3282_v49 = vpack.i.bf16 %v2128_v46, %v2123_v34  ;;  %v2130_v50 = vsel %vm529_vm0, %v2125_v31, %v2129_v43  ;;  %v2154_v51 = vsel %vm541_vm1, %v2149_v32, %v2153_v44 }
 0x728   : > { %v3297_v52 = vpack.i.bf16 %v2130_v50, %v2126_v62  ;;  %v3292_v53 = vpack.i.bf16 %v2154_v51, %v2152_v47  ;;  %v3586_v47 = vld [vmem:[%s4639_s13 + $0xe8] sm:$0xff]   ;;  %v3589_v50 = vld [vmem:[%s4639_s13 + $0xb0] sm:$0xff]  }
 0x729   : > { %3283 = vrot.lane.b32.xlu1 %v3282_v49, %s3607_s23  ;;  %v3588_v49 = vld [vmem:[%s4639_s13 + $0xf0] sm:$0xff]  }
 0x72a   : > { %3298 = vrot.lane.b32.xlu0 %v3297_v52, %s3607_s23  ;;  %s3611_s23 = smov 48  }
 0x72d   : > { %3293 = vrot.lane.b32.xlu1 %v3292_v53, %s3609_s26  ;;  %s3612_s26 = smov 80   ;;  %v3590_v53 = vld [vmem:[%s4639_s13 + $0xf8] sm:$0xff]  }
 0x72e   : > { %3308 = vrot.lane.b32.xlu0 %v3307_v21, %s3610_s18 }
 0x731   : > { %3303 = vrot.lane.b32.xlu1 %v3302_v7, %s3611_s23 }
 0x732   : > { %3318 = vrot.lane.b32.xlu0 %v3317_v11, %s3611_s23 }
 0x735   : > { %3313 = vrot.lane.b32.xlu1 %v3312_v30, %s3610_s18 }
 0x736   : > { %3328 = vrot.lane.b32.xlu0 %v3327_v33, %s3612_s26  ;;  %v3573_v33 = vld [vmem:[%s4639_s13 + $0x88] sm:$0xff]  }
 0x739   : > { %3323 = vrot.lane.b32.xlu1 %v3322_v29, %s3612_s26 }
 0x798   : > { %v4482_v55 = vpop.permute.xlu0 %3288 }
 0x799   : > { %v3291_v25 = vunpack.i.h.bf16 %v4482_v55  ;;  %v3290_v27 = vunpack.i.l.bf16 %v4482_v55  ;;  %v3594_v55 = vld [vmem:[%s4639_s13 + $0x190] sm:$0xff]  }
 0x79b   : > { %v4484_v1 = vpop.permute.xlu1 %3283  ;;  %v2163_v4 = vsel %vm956_vm6, %v3290_v27, %v3291_v25 }
 0x79c   : > { %v3286_v58 = vunpack.i.h.bf16 %v4484_v1  ;;  %v3285_v6 = vunpack.i.l.bf16 %v4484_v1  ;;  %v4488_v7 = vpop.permute.xlu0 %3298  ;;  %v3593_v1 = vld [vmem:[%s4639_s13 + $0x188] sm:$0xff]  }
 0x79d   : > { %v3301_v51 = vunpack.i.h.bf16 %v4488_v7  ;;  %v3300_v52 = vunpack.i.l.bf16 %v4488_v7 }
 0x79e   : > { %v2212_v11 = vsel %vm556_vm4, %v4402_v3, %v3285_v6  ;;  %v2213_v12 = vsel %vm556_vm4, %v2106_v22, %v3286_v58  ;;  %v3576_v3 = vld [vmem:[%s4639_s13 + $0xd0] sm:$0xff]  }
 0x79f   : > { %v4497_v13 = vpop.permute.xlu1 %3293  ;;  %v2223_v15 = vpack.c.bf16 %v2213_v12, %v2212_v11  ;;  %v2140_v56 = vsel %vm556_vm4, %v3286_v58, %v3301_v51  ;;  %v2139_v59 = vsel %vm556_vm4, %v3285_v6, %v3300_v52  ;;  %v3592_v11 = vld [vmem:[%s4639_s13 + $0x180] sm:$0xff]   ;;  %v3595_v58 = vld [vmem:[%s4639_s13 + $0x198] sm:$0xff]  }
 0x7a0   : > { %v3309_v21 = vpop.permute.xlu0 %3308  ;;  %v3296_v28 = vunpack.i.h.bf16 %v4497_v13  ;;  %v3295_v29 = vunpack.i.l.bf16 %v4497_v13  ;;  %v2214_v7 = vsel %vm956_vm6, %v2139_v59, %v3290_v27  ;;  %v3596_v6 = vld [vmem:[%s4639_s13 + $0x1a0] sm:$0xff]  }
 0x7a1   : > { %2696 = vmatprep.mubr.bf16.mxu1 %v2223_v15  ;;  %v3311_v22 = vunpack.i.h.bf16 %v3309_v21  ;;  %v3310_v23 = vunpack.i.l.bf16 %v3309_v21  ;;  %v3597_v21 = vld [vmem:[%s4639_s13 + $0x1a8] sm:$0xff]  }
 0x7a2   : > { %2697 = vmatmul.mubr.bf16.vlgmr.msra.gmra.mrb[16].mxu1 %v2222_v20  ;;  %v2164_v0 = vsel %vm956_vm6, %v3295_v29, %v3296_v28  ;;  %v3580_v20 = vld [vmem:[%s4639_s13 + $0xd8] sm:$0xff]   ;;  %v2215_v61 = vsel %vm956_vm6, %v2140_v56, %v3295_v29 }
 0x7a3   : > { %3148 = vmatpush3.bf16.msra.mxu1 %v3569_v16  ;;  %v3304_v30 = vpop.permute.xlu1 %3303  ;;  %v2191_v62 = vsel %vm1533_vm8, %v3310_v23, %v3311_v22  ;;  %v2224_v12 = vpack.c.bf16 %v2215_v61, %v2214_v7 }
 0x7a4   : > { %v3306_v63 = vunpack.i.h.bf16 %v3304_v30  ;;  %v3305_v2 = vunpack.i.l.bf16 %v3304_v30  ;;  %3149 = vmatprep.subr.bf16.mxu1 %v3572_v24  ;;  %v3319_v5 = vpop.permute.xlu0 %3318 }
 0x7a5   : > { %v3321_v17 = vunpack.i.h.bf16 %v3319_v5  ;;  %v3320_v19 = vunpack.i.l.bf16 %v3319_v5 }
 0x7a6   : > { %v2216_v8 = vsel %vm1295_vm7, %v2163_v4, %v3305_v2  ;;  %v2217_v9 = vsel %vm1295_vm7, %v2164_v0, %v3306_v63 }
 0x7a7   : > { %3150 = vmatpush3.bf16.msra.mxu1 %v3573_v33  ;;  %v3314_v10 = vpop.permute.xlu1 %3313  ;;  %v2225_v14 = vpack.c.bf16 %v2217_v9, %v2216_v8  ;;  %v2178_v38 = vsel %vm1295_vm7, %v3306_v63, %v3321_v17  ;;  %v2177_v34 = vsel %vm1295_vm7, %v3305_v2, %v3320_v19 }
 0x7a8   : > { %3151 = vmatprep.subr.bf16.mxu1 %v3576_v3  ;;  %v3316_v26 = vunpack.i.h.bf16 %v3314_v10  ;;  %v3315_v31 = vunpack.i.l.bf16 %v3314_v10  ;;  %v2218_v43 = vsel %vm1533_vm8, %v2177_v34, %v3310_v23  ;;  %v3329_v13 = vpop.permute.xlu0 %3328  ;;  %v3121_v34 = vld [vmem:[%s4641_s15] ss:$0 sm:$0xff] }
 0x7a9   : > { %2737 = vmatprep.mubr.bf16.mxu1 %v2225_v14  ;;  %v3331_v15 = vunpack.i.h.bf16 %v3329_v13  ;;  %v3330_v16 = vunpack.i.l.bf16 %v3329_v13 }
 0x7aa   : > { %v2192_v39 = vsel %vm1533_vm8, %v3315_v31, %v3316_v26  ;;  %v2219_v40 = vsel %vm1533_vm8, %v2178_v38, %v3315_v31 }
 0x7ab   : > { %3152 = vmatpush3.bf16.msra.mxu1 %v3577_v18  ;;  %v4532_v32 = vpop.permute.xlu1 %3323  ;;  %v2226_v46 = vpack.c.bf16 %v2219_v40, %v2218_v43 }
 0x7ac   : > { %v3326_v35 = vunpack.i.h.bf16 %v4532_v32  ;;  %v3325_v36 = vunpack.i.l.bf16 %v4532_v32  ;;  %3153 = vmatprep.subr.bf16.mxu1 %v3580_v20  ;;  %v3120_v32 = vld [vmem:[%s4640_s14] ss:$0 sm:$0xff] }
 0x7ae   : > { %v2220_v41 = vsel %vm2205_vm11, %v2191_v62, %v3325_v36  ;;  %v2221_v42 = vsel %vm2205_vm11, %v2192_v39, %v3326_v35  ;;  %v2206_v24 = vsel %vm2205_vm11, %v3325_v36, %v3330_v16  ;;  %v2207_v25 = vsel %vm2205_vm11, %v3326_v35, %v3331_v15 }
 0x7af   : > { %3154 = vmatpush3.bf16.msra.mxu1 %v3581_v37  ;;  %v2227_v44 = vpack.c.bf16 %v2221_v42, %v2220_v41  ;;  %v2228_v27 = vpack.c.bf16 %v2207_v25, %v2206_v24 }
 0x7b0   : > { %3155 = vmatprep.subr.bf16.mxu1 %v3584_v60 }
 0x7b1   : > { %2778 = vmatprep.mubr.bf16.mxu0 %v2227_v44 }
 0x7b2   : > { %2779 = vmatmul.mubr.bf16.vlgmr.msra.gmra.mrb[12].mxu0 %v2226_v46 }
 0x7b3   : > { %3156 = vmatpush3.bf16.msra.mxu1 %v3585_v45 }
 0x7b4   : > { %3157 = vmatprep.subr.bf16.mxu1 %v3586_v47 }
 0x7b7   : > { %3158 = vmatpush3.bf16.msra.mxu1 %v3587_v48 }
 0x7b8   : > { %3159 = vmatprep.subr.bf16.mxu1 %v3588_v49 }
 0x7bb   : > { %3160 = vmatpush3.bf16.msra.mxu1 %v3589_v50 }
 0x7bc   : > { %3161 = vmatprep.subr.bf16.mxu1 %v3590_v53 }
 0x7bf   : > { %3162 = vmatpush3.bf16.msra.mxu1 %v3591_v54 }
 0x7c0   : > { %3198 = vmatprep.subr.bf16.mxu1 %v3608_v57 }
 0x7c2   : > { %2738 = vmatmul.mubr.bf16.vlgmr.msra.gmra.mrb[20].mxu1 %v2224_v12 }
 0x7c3   : > { %3199 = vmatpush3.bf16.msra.mxu1 %v3592_v11  ;;  %3210 = vmatprep.mubr.msk.bf16.mxu1 %vm3613_vm12, %v3608_v57 }
 0x7c4   : > { %3200 = vmatprep.subr.bf16.mxu1 %v3608_v57 }
 0x7c7   : > { %3201 = vmatpush3.bf16.msra.mxu1 %v3593_v1 }
 0x7c8   : > { %3202 = vmatprep.subr.bf16.mxu1 %v3608_v57 }
 0x7cb   : > { %3203 = vmatpush3.bf16.msra.mxu1 %v3594_v55 }
 0x7cc   : > { %3204 = vmatprep.subr.bf16.mxu1 %v3608_v57 }
 0x7cf   : > { %3205 = vmatpush3.bf16.msra.mxu1 %v3595_v58 }
 0x7d0   : > { %3206 = vmatprep.subr.bf16.mxu1 %v3608_v57 }
 0x7d3   : > { %3207 = vmatpush3.bf16.msra.mxu1 %v3596_v6 }
 0x7d4   : > { %3208 = vmatprep.subr.bf16.mxu1 %v3608_v57 }
 0x7d7   : > { %3209 = vmatpush3.bf16.msra.mxu1 %v3597_v21 }
 0x7da   : > { %3211 = vmatmul.mubr.msk.bf16.vlgmr.msra.gmra.mrb[24].mxu1 %vm1903_vm9, %v2228_v27 }
 0x875   : > { %v3141_v28 = vpop.f32.mrb[16].mxu1 }
 0x876   : > { %v3142_v29 = vpop.f32.mrb[17].mxu1 }
 0x877   : > { %v3143_v30 = vadd.f32 %v3142_v29, %v3141_v28  ;;  %v3144_v33 = vpop.f32.mrb[18].mxu1 }
 0x878   : > { %v3145_v63 = vpop.f32.mrb[19].mxu1 }
 0x879   : > { %v3146_v2 = vadd.f32 %v3145_v63, %v3144_v33 }
 0x885   : > { %v3185_v3 = vpop.f32.mrb[12].mxu0 }
 0x886   : > { %v3186_v4 = vpop.f32.mrb[13].mxu0 }
 0x887   : > { %v3187_v0 = vadd.f32 %v3186_v4, %v3185_v3  ;;  %v3188_v5 = vpop.f32.mrb[14].mxu0 }
 0x888   : > { %v3189_v57 = vpop.f32.mrb[15].mxu0 }
 0x889   : > { %v3190_v8 = vadd.f32 %v3189_v57, %v3188_v5 }
 0x895   : > { %v3163_v9 = vpop.f32.mrb[20].mxu1 }
 0x896   : > { %v3164_v10 = vpop.f32.mrb[21].mxu1 }
 0x897   : > { %v3165_v14 = vadd.f32 %v3164_v10, %v3163_v9  ;;  %v3166_v18 = vpop.f32.mrb[22].mxu1 }
 0x898   : > { %v3167_v17 = vpop.f32.mrb[23].mxu1 }
 0x899   : > { %v2740_v19 = vadd.f32 %v3165_v14, %v3143_v30  ;;  %v3168_v20 = vadd.f32 %v3167_v17, %v3166_v18 }
 0x89b   : > { %v2743_v22 = vadd.f32 %v3168_v20, %v3146_v2  ;;  %v2781_v23 = vadd.f32 %v3187_v0, %v2740_v19 }
 0x89d   : > { %v2784_v26 = vadd.f32 %v3190_v8, %v2743_v22 }
 0x8ad   : > { %v2821_v31 = vpop.f32.mrb[24].mxu1 }
 0x8ae   : > { %v2822_v37 = vadd.f32 %v2821_v31, %v2781_v23  ;;  %v3212_v38 = vpop.f32.mrb[25].mxu1 }
 0x8af   : > { %v2824_v35 = vpop.f32.mrb[26].mxu1 }
 0x8b0   : > { %v2835_v36 = vmul.f32 %v3120_v32, %v2822_v37  ;;  %v2825_v60 = vadd.f32 %v2824_v35, %v2784_v26  ;;  %v3213_v62 = vpop.f32.mrb[27].mxu1 }
 0x8b2   : > { %v2844_v39 = vadd.f32 %v3121_v34, %v2835_v36  ;;  %v2836_v40 = vmul.f32 %v3120_v32, %v2825_v60 }
 0x8b4   : > { %2846 = vst [vmem:[%s521_s17] sm:$0xff] %v2844_v39  ;;  %v2845_v41 = vadd.f32 %v3121_v34, %v2836_v40 }
 0x8b6   : > { %2847 = vst [vmem:[%s521_s17 + $0x8] sm:$0xff] %v2845_v41 }
 0x8b7 PF: > { %s26_s21 = sadd.s32 1, %s3604_s21  }
 0x8b8   : > { %p23_p4 = scmp.ge.s32.totalorder %s26_s21, 4  }
 0x8ba   :  { %25 = sbr.rel (!%p23_p4) target bundleno = 2 (0x2), region = 114 }

</bundles_post_ra>
